<compile_context>
chip_gen: v7x
topology: tpu7x:2x2x1
jax: 0.10.0
libtpu: 0.0.40
codegen_flags: <defaults>
</compile_context>

<pallas_src>
import math

import jax
import jax.numpy as jnp
from jax import lax
from jax.experimental import pallas as pl
from jax.experimental.pallas import tpu as pltpu


def _round_up(x, m):
    return (x + m - 1) // m * m


def _pad_axis(a, axis, size):
    if a.shape[axis] == size:
        return a
    pads = [(0, 0)] * a.ndim
    pads[axis] = (0, size - a.shape[axis])
    return jnp.pad(a, pads)


def _decoder_kernel(lens_ref, x_ref, h0_ref, c0_ref,
                    wih_ref, whh_ref, b_ref, wfc_ref, bfc_ref,
                    logits_ref, hT_ref, cT_ref,
                    gx_scr, h_tile, h_carry, c_carry):
    Bp, Hp = h0_ref.shape
    Tb = gx_scr.shape[0] // Bp
    tile = pl.program_id(0)

    # Load the initial recurrent state into the cross-tile carry once.
    @pl.when(tile == 0)
    def _():
        h_carry[...] = h0_ref[...]
        c_carry[...] = c0_ref[...]

    # Input projection for the whole time tile: one batched MXU matmul,
    # hoisted out of the serial recurrence.  (b_ih + b_hh) is folded in here.
    gx_scr[...] = (
        jnp.dot(x_ref[...], wih_ref[...], preferred_element_type=jnp.float32)
        + b_ref[...])

    lens_v = lens_ref[...]            # (Bp, 1) int32, read once per tile
    t_base = tile * Tb
    w_dt = whh_ref.dtype

    def step(tt, carry):
        h_prev, c_prev = carry        # (Bp, Hp) f32
        row = pl.multiple_of(tt * Bp, Bp)
        # Exactly one MXU matmul on the recurrent critical path.
        gates = gx_scr[pl.ds(row, Bp), :] + jnp.dot(
            h_prev.astype(w_dt), whh_ref[...],
            preferred_element_type=jnp.float32)          # (Bp, 4*Hp)
        # Gate slices are 128-lane aligned because H is padded to Hp.
        i_g = jax.nn.sigmoid(gates[:, 0 * Hp:1 * Hp])
        f_g = jax.nn.sigmoid(gates[:, 1 * Hp:2 * Hp])
        g_g = jnp.tanh(gates[:, 2 * Hp:3 * Hp])
        o_g = jax.nn.sigmoid(gates[:, 3 * Hp:4 * Hp])
        c_new = f_g * c_prev + i_g * g_g
        h_new = o_g * jnp.tanh(c_new)
        # packed-sequence semantics: padded steps freeze the state, emit 0.
        m = (t_base + tt) < lens_v                        # (Bp, 1) bool
        h_next = jnp.where(m, h_new, h_prev)
        c_next = jnp.where(m, c_new, c_prev)
        h_tile[pl.ds(row, Bp), :] = jnp.where(m, h_new, 0.0)
        return h_next, c_next

    unroll = True if Tb <= 16 else 8
    h_fin, c_fin = lax.fori_loop(0, Tb, step,
                                 (h_carry[...], c_carry[...]),
                                 unroll=unroll)
    h_carry[...] = h_fin
    c_carry[...] = c_fin

    # Output head for the whole tile: one batched MXU matmul.  The store is
    # lane dense because O is padded to a multiple of 128.
    logits_ref[...] = (
        jnp.dot(h_tile[...].astype(wfc_ref.dtype), wfc_ref[...],
                preferred_element_type=jnp.float32)
        + bfc_ref[...])

    @pl.when(tile == pl.num_programs(0) - 1)
    def _():
        hT_ref[...] = h_fin
        cT_ref[...] = c_fin


def rnn_decoder_fast(word, h, c, input_lens, params, *,
                     time_tile=None, compute_dtype=jnp.float32):
    """word: (B, T, I); h, c: (1, B, H); input_lens: (B,) int.

    Returns (cell_out, context_mask, (h, c)) like RNNDecoderFast.forward,
    with the time axis kept at the static T (masked steps emit fc-bias rows).
    """
    B, T_in, I = word.shape
    H = h.shape[-1]
    O = params["w_fc"].shape[0]

    Bp = _round_up(max(B, 1), 8)      # sublane-align batch
    Hp = _round_up(H, 128)            # lane-align hidden (gate slices aligned)
    Op = _round_up(O, 128)            # lane-dense logits store
    Tb = int(time_tile) if time_tile is not None else min(T_in, 16)
    Tb = max(Tb, 1)
    T_pad = _round_up(T_in, Tb)
    n_tiles = T_pad // Tb

    # ---- operand layout prep (static shapes, fully jittable) ----
    x_tm = jnp.transpose(word, (1, 0, 2))                    # (T, B, I)
    x_tm = _pad_axis(_pad_axis(x_tm, 0, T_pad), 1, Bp)       # (T_pad, Bp, I)
    x_flat = x_tm.reshape(T_pad * Bp, I).astype(compute_dtype)

    lens_p = _pad_axis(input_lens.astype(jnp.int32).reshape(B, 1), 0, Bp)

    h0p = _pad_axis(_pad_axis(h[0].astype(jnp.float32), 0, Bp), 1, Hp)
    c0p = _pad_axis(_pad_axis(c[0].astype(jnp.float32), 0, Bp), 1, Hp)

    def pad_gate_rows(w):   # (4H, cols) -> (4Hp, cols), zero-pad each gate block
        cols = w.shape[1]
        return _pad_axis(w.reshape(4, H, cols), 1, Hp).reshape(4 * Hp, cols)

    wih_t = pad_gate_rows(params["w_ih"]).T.astype(compute_dtype)          # (I, 4Hp)
    whh_t = _pad_axis(pad_gate_rows(params["w_hh"]).T, 0, Hp)
    whh_t = whh_t.astype(compute_dtype)                                    # (Hp, 4Hp)
    b_sum = _pad_axis((params["b_ih"] + params["b_hh"]).reshape(4, H), 1, Hp)
    b_sum = b_sum.reshape(1, 4 * Hp).astype(jnp.float32)
    wfc_t = _pad_axis(_pad_axis(params["w_fc"].T, 0, Hp), 1, Op)
    wfc_t = wfc_t.astype(compute_dtype)                                    # (Hp, Op)
    bfc = _pad_axis(params["b_fc"].reshape(1, O), 1, Op).astype(jnp.float32)

    const2d = lambda i: (0, 0)
    tiled2d = lambda i: (i, 0)

    logits_flat, hTp, cTp = pl.pallas_call(
        _decoder_kernel,
        out_shape=(
            jax.ShapeDtypeStruct((T_pad * Bp, Op), jnp.float32),
            jax.ShapeDtypeStruct((Bp, Hp), jnp.float32),
            jax.ShapeDtypeStruct((Bp, Hp), jnp.float32),
        ),
        grid_spec=pltpu.PrefetchScalarGridSpec(
            num_scalar_prefetch=0,
            grid=(n_tiles,),
            in_specs=[
                pl.BlockSpec((Bp, 1), const2d),           # input_lens
                pl.BlockSpec((Tb * Bp, I), tiled2d),      # x (time-major, flat)
                pl.BlockSpec((Bp, Hp), const2d),          # h0
                pl.BlockSpec((Bp, Hp), const2d),          # c0
                pl.BlockSpec((I, 4 * Hp), const2d),       # W_ih^T (gate padded)
                pl.BlockSpec((Hp, 4 * Hp), const2d),      # W_hh^T (gate padded)
                pl.BlockSpec((1, 4 * Hp), const2d),       # b_ih + b_hh
                pl.BlockSpec((Hp, Op), const2d),          # W_fc^T
                pl.BlockSpec((1, Op), const2d),           # b_fc
            ],
            out_specs=[
                pl.BlockSpec((Tb * Bp, Op), tiled2d),     # logits (lane dense)
                pl.BlockSpec((Bp, Hp), const2d),          # final h
                pl.BlockSpec((Bp, Hp), const2d),          # final c
            ],
            scratch_shapes=[
                pltpu.VMEM((Tb * Bp, 4 * Hp), jnp.float32),  # x-projection tile
                pltpu.VMEM((Tb * Bp, Hp), jnp.float32),      # masked h tile
                pltpu.VMEM((Bp, Hp), jnp.float32),           # h carry
                pltpu.VMEM((Bp, Hp), jnp.float32),           # c carry
            ],
        ),
        compiler_params=pltpu.CompilerParams(
            dimension_semantics=("arbitrary",),     # serial recurrence over time
            vmem_limit_bytes=32 * 1024 * 1024),     # safe on v5e/v6e/v7x
    )(lens_p, x_flat, h0p, c0p, wih_t, whh_t, b_sum, wfc_t, bfc)

    logits = logits_flat.reshape(T_pad, Bp, Op)[:T_in, :B, :O]   # (T, B, O)
    hT = hTp[:B, :H][None]
    cT = cTp[:B, :H][None]
    context_mask = (jnp.arange(T_in)[None, :] < input_lens[:, None]).astype(jnp.int32)

    cell_out = logits[0] if T_in == 1 else logits   # mimic output.squeeze(0)
    return cell_out, context_mask, (hT, cT)


def _reference(word, h, c, input_lens, params):
    """Pure-JAX masked-LSTM + fc reference (static T) for correctness check."""
    B, T_in, I = word.shape
    H = h.shape[-1]
    x_tm = jnp.transpose(word, (1, 0, 2))
    mask = (jnp.arange(T_in)[None, :] < input_lens[:, None]).astype(jnp.float32)
    wih, whh = params["w_ih"], params["w_hh"]
    b = params["b_ih"] + params["b_hh"]

    def step(carry, inp):
        hp, cp = carry
        x_t, m = inp
        g = x_t @ wih.T + hp @ whh.T + b
        i_g = jax.nn.sigmoid(g[:, 0:H])
        f_g = jax.nn.sigmoid(g[:, H:2 * H])
        g_g = jnp.tanh(g[:, 2 * H:3 * H])
        o_g = jax.nn.sigmoid(g[:, 3 * H:4 * H])
        cn = f_g * cp + i_g * g_g
        hn = o_g * jnp.tanh(cn)
        return (m * hn + (1 - m) * hp, m * cn + (1 - m) * cp), m * hn

    (hT, cT), outs = lax.scan(step, (h[0], c[0]), (x_tm, mask.T[:, :, None]))
    logits = outs @ params["w_fc"].T + params["b_fc"]
    return (logits[0] if T_in == 1 else logits), hT, cT


if __name__ == "__main__":
    B, T_in, I, H, O = 2, 8, 16, 32, 8
    key = jax.random.PRNGKey(0)
    ks = jax.random.split(key, 9)
    bound = 1.0 / math.sqrt(H)

    params = {
        "w_ih": jax.random.uniform(ks[0], (4 * H, I), jnp.float32, -bound, bound),
        "w_hh": jax.random.uniform(ks[1], (4 * H, H), jnp.float32, -bound, bound),
        "b_ih": jax.random.uniform(ks[2], (4 * H,), jnp.float32, -bound, bound),
        "b_hh": jax.random.uniform(ks[3], (4 * H,), jnp.float32, -bound, bound),
        "w_fc": jax.random.uniform(ks[4], (O, H), jnp.float32, -bound, bound),
        "b_fc": jax.random.uniform(ks[5], (O,), jnp.float32, -bound, bound),
    }

    word = jax.random.normal(ks[6], (B, T_in, I), jnp.float32)
    h0 = jax.random.normal(ks[7], (1, B, H), jnp.float32)
    c0 = jax.random.normal(ks[8], (1, B, H), jnp.float32)
    input_lens = jnp.array([8, 5], dtype=jnp.int32)

    decoder = jax.jit(rnn_decoder_fast,
                      static_argnames=("time_tile", "compute_dtype"))

    ref_out, ref_h, ref_c = _reference(word, h0, c0, input_lens, params)
    exp_mask = (jnp.arange(T_in)[None, :] < input_lens[:, None]).astype(jnp.int32)

    # Single time tile (whole sequence in one grid step).
    cell_out, context_mask, (hT, cT) = decoder(word, h0, c0, input_lens, params)
    jax.block_until_ready((cell_out, context_mask, hT, cT))
    assert cell_out.shape == (T_in, B, O)
    assert jnp.allclose(cell_out, ref_out, atol=1e-3, rtol=1e-3), "logits mismatch"
    assert jnp.allclose(hT[0], ref_h, atol=1e-3, rtol=1e-3), "h mismatch"
    assert jnp.allclose(cT[0], ref_c, atol=1e-3, rtol=1e-3), "c mismatch"
    assert jnp.array_equal(context_mask, exp_mask), "context_mask mismatch"

    # Multi-tile path (exercises the cross-tile h/c carry in VMEM scratch).
    cell_out2, _, (hT2, cT2) = decoder(word, h0, c0, input_lens, params,
                                       time_tile=4)
    jax.block_until_ready((cell_out2, hT2, cT2))
    assert jnp.allclose(cell_out2, ref_out, atol=1e-3, rtol=1e-3), "tiled logits mismatch"
    assert jnp.allclose(hT2[0], ref_h, atol=1e-3, rtol=1e-3), "tiled h mismatch"
    assert jnp.allclose(cT2[0], ref_c, atol=1e-3, rtol=1e-3), "tiled c mismatch"

    print("KERNEL_OK")
</pallas_src>

<mosaic_0001>
module attributes {stable_mosaic.version = 11 : i64} {
  func.func @_decoder_kernel(%arg0: i32, %arg1: memref<8x1xi32, #tpu.memory_space<vmem>>, %arg2: memref<64x16xf32, #tpu.memory_space<vmem>>, %arg3: memref<8x128xf32, #tpu.memory_space<vmem>>, %arg4: memref<8x128xf32, #tpu.memory_space<vmem>>, %arg5: memref<16x512xf32, #tpu.memory_space<vmem>>, %arg6: memref<128x512xf32, #tpu.memory_space<vmem>>, %arg7: memref<1x512xf32, #tpu.memory_space<vmem>>, %arg8: memref<128x128xf32, #tpu.memory_space<vmem>>, %arg9: memref<1x128xf32, #tpu.memory_space<vmem>>, %arg10: memref<64x128xf32, #tpu.memory_space<vmem>>, %arg11: memref<8x128xf32, #tpu.memory_space<vmem>>, %arg12: memref<8x128xf32, #tpu.memory_space<vmem>>, %arg13: memref<64x512xf32, #tpu.memory_space<vmem>>, %arg14: memref<64x128xf32, #tpu.memory_space<vmem>>, %arg15: memref<8x128xf32, #tpu.memory_space<vmem>>, %arg16: memref<8x128xf32, #tpu.memory_space<vmem>>) attributes {dimension_semantics = [#tpu.dimension_semantics<arbitrary>], iteration_bounds = array<i64: 1>, scalar_prefetch = 0 : i64, scratch_operands = 4 : i64, tpu.core_type = #tpu.core_type<tc>, window_params = [{pipeline_mode = #tpu.pipeline_mode<synchronous>, transform_indices = @transform_0, window_bounds = array<i64: 8, 1>}, {transform_indices = @transform_1, window_bounds = array<i64: 64, 16>}, {pipeline_mode = #tpu.pipeline_mode<synchronous>, transform_indices = @transform_2, window_bounds = array<i64: 8, 128>}, {pipeline_mode = #tpu.pipeline_mode<synchronous>, transform_indices = @transform_3, window_bounds = array<i64: 8, 128>}, {pipeline_mode = #tpu.pipeline_mode<synchronous>, transform_indices = @transform_4, window_bounds = array<i64: 16, 512>}, {pipeline_mode = #tpu.pipeline_mode<synchronous>, transform_indices = @transform_5, window_bounds = array<i64: 128, 512>}, {pipeline_mode = #tpu.pipeline_mode<synchronous>, transform_indices = @transform_6, window_bounds = array<i64: 1, 512>}, {pipeline_mode = #tpu.pipeline_mode<synchronous>, transform_indices = @transform_7, window_bounds = array<i64: 128, 128>}, {pipeline_mode = #tpu.pipeline_mode<synchronous>, transform_indices = @transform_8, window_bounds = array<i64: 1, 128>}, {transform_indices = @transform_9, window_bounds = array<i64: 64, 128>}, {pipeline_mode = #tpu.pipeline_mode<synchronous>, transform_indices = @transform_10, window_bounds = array<i64: 8, 128>}, {pipeline_mode = #tpu.pipeline_mode<synchronous>, transform_indices = @transform_11, window_bounds = array<i64: 8, 128>}]} {
    %c0_i32 = arith.constant 0 : i32
    %0 = arith.cmpi eq, %arg0, %c0_i32 : i32
    %1 = arith.extui %0 : i1 to i32
    %c0_i32_0 = arith.constant 0 : i32
    %2 = arith.cmpi ne, %1, %c0_i32_0 : i32
    scf.if %2 {
      %c0_111 = arith.constant 0 : index
      %c0_112 = arith.constant 0 : index
      %402 = vector.load %arg3[%c0_111, %c0_112] : memref<8x128xf32, #tpu.memory_space<vmem>>, vector<8x128xf32>
      %c0_113 = arith.constant 0 : index
      %c0_114 = arith.constant 0 : index
      %403 = vector.load %arg15[%c0_113, %c0_114] : memref<8x128xf32, #tpu.memory_space<vmem>>, vector<8x128xf32>
      tpu.vector_store %arg15[%c0_113, %c0_114], %402 {strides = array<i32>} : memref<8x128xf32, #tpu.memory_space<vmem>>, vector<8x128xf32>,
      %c0_115 = arith.constant 0 : index
      %c0_116 = arith.constant 0 : index
      %404 = vector.load %arg4[%c0_115, %c0_116] : memref<8x128xf32, #tpu.memory_space<vmem>>, vector<8x128xf32>
      %c0_117 = arith.constant 0 : index
      %c0_118 = arith.constant 0 : index
      %405 = vector.load %arg16[%c0_117, %c0_118] : memref<8x128xf32, #tpu.memory_space<vmem>>, vector<8x128xf32>
      tpu.vector_store %arg16[%c0_117, %c0_118], %404 {strides = array<i32>} : memref<8x128xf32, #tpu.memory_space<vmem>>, vector<8x128xf32>,
    } else {
    }
    %c0 = arith.constant 0 : index
    %c0_1 = arith.constant 0 : index
    %3 = vector.load %arg2[%c0, %c0_1] : memref<64x16xf32, #tpu.memory_space<vmem>>, vector<64x16xf32>
    %c0_2 = arith.constant 0 : index
    %c0_3 = arith.constant 0 : index
    %4 = vector.load %arg5[%c0_2, %c0_3] : memref<16x512xf32, #tpu.memory_space<vmem>>, vector<16x512xf32>
    %cst = arith.constant dense<0.000000e+00> : vector<64x512xf32>
    %5 = tpu.matmul %3, %4, %cst {dimension_numbers = #tpu.dot_dimension_numbers<[1], [0], [0], [1], [0, 0, 1, 1], [], []>} : vector<64x16xf32>, vector<16x512xf32>, vector<64x512xf32> -> vector<64x512xf32>
    %c0_4 = arith.constant 0 : index
    %c0_5 = arith.constant 0 : index
    %6 = vector.load %arg7[%c0_4, %c0_5] : memref<1x512xf32, #tpu.memory_space<vmem>>, vector<1x512xf32>
    %7 = vector.broadcast %6 : vector<1x512xf32> to vector<64x512xf32>
    %8 = arith.addf %5, %7 : vector<64x512xf32>
    %c0_6 = arith.constant 0 : index
    %c0_7 = arith.constant 0 : index
    %9 = vector.load %arg13[%c0_6, %c0_7] : memref<64x512xf32, #tpu.memory_space<vmem>>, vector<64x512xf32>
    tpu.vector_store %arg13[%c0_6, %c0_7], %8 {strides = array<i32>} : memref<64x512xf32, #tpu.memory_space<vmem>>, vector<64x512xf32>,
    %c0_8 = arith.constant 0 : index
    %c0_9 = arith.constant 0 : index
    %10 = vector.load %arg1[%c0_8, %c0_9] : memref<8x1xi32, #tpu.memory_space<vmem>>, vector<8x1xi32>
    %c8_i32 = arith.constant 8 : i32
    %11 = arith.muli %arg0, %c8_i32 : i32
    %c0_10 = arith.constant 0 : index
    %c0_11 = arith.constant 0 : index
    %12 = vector.load %arg15[%c0_10, %c0_11] : memref<8x128xf32, #tpu.memory_space<vmem>>, vector<8x128xf32>
    %c0_12 = arith.constant 0 : index
    %c0_13 = arith.constant 0 : index
    %13 = vector.load %arg16[%c0_12, %c0_13] : memref<8x128xf32, #tpu.memory_space<vmem>>, vector<8x128xf32>
    %c0_i32_14 = arith.constant 0 : i32
    %c8_i32_15 = arith.constant 8 : i32
    %14 = arith.muli %c0_i32_14, %c8_i32_15 : i32
    %15 = tpu.assume_multiple %14, 8 : i32
    %16 = arith.index_cast %15 : i32 to index
    %c0_16 = arith.constant 0 : index
    %17 = vector.load %arg13[%16, %c0_16] : memref<64x512xf32, #tpu.memory_space<vmem>>, vector<8x512xf32>
    %c0_17 = arith.constant 0 : index
    %c0_18 = arith.constant 0 : index
    %18 = vector.load %arg6[%c0_17, %c0_18] : memref<128x512xf32, #tpu.memory_space<vmem>>, vector<128x512xf32>
    %cst_19 = arith.constant dense<0.000000e+00> : vector<8x512xf32>
    %19 = tpu.matmul %12, %18, %cst_19 {dimension_numbers = #tpu.dot_dimension_numbers<[1], [0], [0], [1], [0, 0, 1, 1], [], []>} : vector<8x128xf32>, vector<128x512xf32>, vector<8x512xf32> -> vector<8x512xf32>
    %20 = arith.addf %17, %19 : vector<8x512xf32>
    %21 = vector.extract_strided_slice %20 {offsets = [0, 0], sizes = [8, 128], strides = [1, 1]} : vector<8x512xf32> to vector<8x128xf32>
    %22 = arith.negf %21 : vector<8x128xf32>
    %23 = math.exp %22 : vector<8x128xf32>
    %cst_20 = arith.constant 1.000000e+00 : f32
    %24 = vector.broadcast %cst_20 : f32 to vector<8x128xf32>
    %25 = arith.addf %24, %23 : vector<8x128xf32>
    %26 = arith.divf %24, %25 : vector<8x128xf32>
    %27 = vector.extract_strided_slice %20 {offsets = [0, 128], sizes = [8, 128], strides = [1, 1]} : vector<8x512xf32> to vector<8x128xf32>
    %28 = arith.negf %27 : vector<8x128xf32>
    %29 = math.exp %28 : vector<8x128xf32>
    %cst_21 = arith.constant 1.000000e+00 : f32
    %30 = vector.broadcast %cst_21 : f32 to vector<8x128xf32>
    %31 = arith.addf %30, %29 : vector<8x128xf32>
    %32 = arith.divf %30, %31 : vector<8x128xf32>
    %33 = vector.extract_strided_slice %20 {offsets = [0, 256], sizes = [8, 128], strides = [1, 1]} : vector<8x512xf32> to vector<8x128xf32>
    %34 = math.tanh %33 : vector<8x128xf32>
    %35 = vector.extract_strided_slice %20 {offsets = [0, 384], sizes = [8, 128], strides = [1, 1]} : vector<8x512xf32> to vector<8x128xf32>
    %36 = arith.negf %35 : vector<8x128xf32>
    %37 = math.exp %36 : vector<8x128xf32>
    %cst_22 = arith.constant 1.000000e+00 : f32
    %38 = vector.broadcast %cst_22 : f32 to vector<8x128xf32>
    %39 = arith.addf %38, %37 : vector<8x128xf32>
    %40 = arith.divf %38, %39 : vector<8x128xf32>
    %41 = arith.mulf %32, %13 : vector<8x128xf32>
    %42 = arith.mulf %26, %34 : vector<8x128xf32>
    %43 = arith.addf %41, %42 : vector<8x128xf32>
    %44 = math.tanh %43 : vector<8x128xf32>
    %45 = arith.mulf %40, %44 : vector<8x128xf32>
    %46 = arith.addi %11, %c0_i32_14 : i32
    %47 = vector.broadcast %46 : i32 to vector<8x1xi32>
    %48 = arith.cmpi slt, %47, %10 : vector<8x1xi32>
    %49 = vector.shape_cast %48 : vector<8x1xi1> to vector<8x1xi1>
    %50 = vector.broadcast %49 : vector<8x1xi1> to vector<8x128xi1>
    %51 = arith.select %50, %45, %12 : vector<8x128xi1>, vector<8x128xf32>
    %52 = vector.shape_cast %48 : vector<8x1xi1> to vector<8x1xi1>
    %53 = vector.broadcast %52 : vector<8x1xi1> to vector<8x128xi1>
    %54 = arith.select %53, %43, %13 : vector<8x128xi1>, vector<8x128xf32>
    %cst_23 = arith.constant 0.000000e+00 : f32
    %55 = vector.shape_cast %48 : vector<8x1xi1> to vector<8x1xi1>
    %56 = vector.broadcast %55 : vector<8x1xi1> to vector<8x128xi1>
    %57 = vector.broadcast %cst_23 : f32 to vector<8x128xf32>
    %58 = arith.select %56, %45, %57 : vector<8x128xi1>, vector<8x128xf32>
    %59 = arith.index_cast %15 : i32 to index
    %c0_24 = arith.constant 0 : index
    %60 = vector.load %arg14[%59, %c0_24] : memref<64x128xf32, #tpu.memory_space<vmem>>, vector<8x128xf32>
    tpu.vector_store %arg14[%59, %c0_24], %58 {strides = array<i32>} : memref<64x128xf32, #tpu.memory_space<vmem>>, vector<8x128xf32>,
    %c1_i32 = arith.constant 1 : i32
    %c8_i32_25 = arith.constant 8 : i32
    %61 = arith.muli %c1_i32, %c8_i32_25 : i32
    %62 = tpu.assume_multiple %61, 8 : i32
    %63 = arith.index_cast %62 : i32 to index
    %c0_26 = arith.constant 0 : index
    %64 = vector.load %arg13[%63, %c0_26] : memref<64x512xf32, #tpu.memory_space<vmem>>, vector<8x512xf32>
    %c0_27 = arith.constant 0 : index
    %c0_28 = arith.constant 0 : index
    %65 = vector.load %arg6[%c0_27, %c0_28] : memref<128x512xf32, #tpu.memory_space<vmem>>, vector<128x512xf32>
    %cst_29 = arith.constant dense<0.000000e+00> : vector<8x512xf32>
    %66 = tpu.matmul %51, %65, %cst_29 {dimension_numbers = #tpu.dot_dimension_numbers<[1], [0], [0], [1], [0, 0, 1, 1], [], []>} : vector<8x128xf32>, vector<128x512xf32>, vector<8x512xf32> -> vector<8x512xf32>
    %67 = arith.addf %64, %66 : vector<8x512xf32>
    %68 = vector.extract_strided_slice %67 {offsets = [0, 0], sizes = [8, 128], strides = [1, 1]} : vector<8x512xf32> to vector<8x128xf32>
    %69 = arith.negf %68 : vector<8x128xf32>
    %70 = math.exp %69 : vector<8x128xf32>
    %cst_30 = arith.constant 1.000000e+00 : f32
    %71 = vector.broadcast %cst_30 : f32 to vector<8x128xf32>
    %72 = arith.addf %71, %70 : vector<8x128xf32>
    %73 = arith.divf %71, %72 : vector<8x128xf32>
    %74 = vector.extract_strided_slice %67 {offsets = [0, 128], sizes = [8, 128], strides = [1, 1]} : vector<8x512xf32> to vector<8x128xf32>
    %75 = arith.negf %74 : vector<8x128xf32>
    %76 = math.exp %75 : vector<8x128xf32>
    %cst_31 = arith.constant 1.000000e+00 : f32
    %77 = vector.broadcast %cst_31 : f32 to vector<8x128xf32>
    %78 = arith.addf %77, %76 : vector<8x128xf32>
    %79 = arith.divf %77, %78 : vector<8x128xf32>
    %80 = vector.extract_strided_slice %67 {offsets = [0, 256], sizes = [8, 128], strides = [1, 1]} : vector<8x512xf32> to vector<8x128xf32>
    %81 = math.tanh %80 : vector<8x128xf32>
    %82 = vector.extract_strided_slice %67 {offsets = [0, 384], sizes = [8, 128], strides = [1, 1]} : vector<8x512xf32> to vector<8x128xf32>
    %83 = arith.negf %82 : vector<8x128xf32>
    %84 = math.exp %83 : vector<8x128xf32>
    %cst_32 = arith.constant 1.000000e+00 : f32
    %85 = vector.broadcast %cst_32 : f32 to vector<8x128xf32>
    %86 = arith.addf %85, %84 : vector<8x128xf32>
    %87 = arith.divf %85, %86 : vector<8x128xf32>
    %88 = arith.mulf %79, %54 : vector<8x128xf32>
    %89 = arith.mulf %73, %81 : vector<8x128xf32>
    %90 = arith.addf %88, %89 : vector<8x128xf32>
    %91 = math.tanh %90 : vector<8x128xf32>
    %92 = arith.mulf %87, %91 : vector<8x128xf32>
    %93 = arith.addi %11, %c1_i32 : i32
    %94 = vector.broadcast %93 : i32 to vector<8x1xi32>
    %95 = arith.cmpi slt, %94, %10 : vector<8x1xi32>
    %96 = vector.shape_cast %95 : vector<8x1xi1> to vector<8x1xi1>
    %97 = vector.broadcast %96 : vector<8x1xi1> to vector<8x128xi1>
    %98 = arith.select %97, %92, %51 : vector<8x128xi1>, vector<8x128xf32>
    %99 = vector.shape_cast %95 : vector<8x1xi1> to vector<8x1xi1>
    %100 = vector.broadcast %99 : vector<8x1xi1> to vector<8x128xi1>
    %101 = arith.select %100, %90, %54 : vector<8x128xi1>, vector<8x128xf32>
    %cst_33 = arith.constant 0.000000e+00 : f32
    %102 = vector.shape_cast %95 : vector<8x1xi1> to vector<8x1xi1>
    %103 = vector.broadcast %102 : vector<8x1xi1> to vector<8x128xi1>
    %104 = vector.broadcast %cst_33 : f32 to vector<8x128xf32>
    %105 = arith.select %103, %92, %104 : vector<8x128xi1>, vector<8x128xf32>
    %106 = arith.index_cast %62 : i32 to index
    %c0_34 = arith.constant 0 : index
    %107 = vector.load %arg14[%106, %c0_34] : memref<64x128xf32, #tpu.memory_space<vmem>>, vector<8x128xf32>
    tpu.vector_store %arg14[%106, %c0_34], %105 {strides = array<i32>} : memref<64x128xf32, #tpu.memory_space<vmem>>, vector<8x128xf32>,
    %c2_i32 = arith.constant 2 : i32
    %c8_i32_35 = arith.constant 8 : i32
    %108 = arith.muli %c2_i32, %c8_i32_35 : i32
    %109 = tpu.assume_multiple %108, 8 : i32
    %110 = arith.index_cast %109 : i32 to index
    %c0_36 = arith.constant 0 : index
    %111 = vector.load %arg13[%110, %c0_36] : memref<64x512xf32, #tpu.memory_space<vmem>>, vector<8x512xf32>
    %c0_37 = arith.constant 0 : index
    %c0_38 = arith.constant 0 : index
    %112 = vector.load %arg6[%c0_37, %c0_38] : memref<128x512xf32, #tpu.memory_space<vmem>>, vector<128x512xf32>
    %cst_39 = arith.constant dense<0.000000e+00> : vector<8x512xf32>
    %113 = tpu.matmul %98, %112, %cst_39 {dimension_numbers = #tpu.dot_dimension_numbers<[1], [0], [0], [1], [0, 0, 1, 1], [], []>} : vector<8x128xf32>, vector<128x512xf32>, vector<8x512xf32> -> vector<8x512xf32>
    %114 = arith.addf %111, %113 : vector<8x512xf32>
    %115 = vector.extract_strided_slice %114 {offsets = [0, 0], sizes = [8, 128], strides = [1, 1]} : vector<8x512xf32> to vector<8x128xf32>
    %116 = arith.negf %115 : vector<8x128xf32>
    %117 = math.exp %116 : vector<8x128xf32>
    %cst_40 = arith.constant 1.000000e+00 : f32
    %118 = vector.broadcast %cst_40 : f32 to vector<8x128xf32>
    %119 = arith.addf %118, %117 : vector<8x128xf32>
    %120 = arith.divf %118, %119 : vector<8x128xf32>
    %121 = vector.extract_strided_slice %114 {offsets = [0, 128], sizes = [8, 128], strides = [1, 1]} : vector<8x512xf32> to vector<8x128xf32>
    %122 = arith.negf %121 : vector<8x128xf32>
    %123 = math.exp %122 : vector<8x128xf32>
    %cst_41 = arith.constant 1.000000e+00 : f32
    %124 = vector.broadcast %cst_41 : f32 to vector<8x128xf32>
    %125 = arith.addf %124, %123 : vector<8x128xf32>
    %126 = arith.divf %124, %125 : vector<8x128xf32>
    %127 = vector.extract_strided_slice %114 {offsets = [0, 256], sizes = [8, 128], strides = [1, 1]} : vector<8x512xf32> to vector<8x128xf32>
    %128 = math.tanh %127 : vector<8x128xf32>
    %129 = vector.extract_strided_slice %114 {offsets = [0, 384], sizes = [8, 128], strides = [1, 1]} : vector<8x512xf32> to vector<8x128xf32>
    %130 = arith.negf %129 : vector<8x128xf32>
    %131 = math.exp %130 : vector<8x128xf32>
    %cst_42 = arith.constant 1.000000e+00 : f32
    %132 = vector.broadcast %cst_42 : f32 to vector<8x128xf32>
    %133 = arith.addf %132, %131 : vector<8x128xf32>
    %134 = arith.divf %132, %133 : vector<8x128xf32>
    %135 = arith.mulf %126, %101 : vector<8x128xf32>
    %136 = arith.mulf %120, %128 : vector<8x128xf32>
    %137 = arith.addf %135, %136 : vector<8x128xf32>
    %138 = math.tanh %137 : vector<8x128xf32>
    %139 = arith.mulf %134, %138 : vector<8x128xf32>
    %140 = arith.addi %11, %c2_i32 : i32
    %141 = vector.broadcast %140 : i32 to vector<8x1xi32>
    %142 = arith.cmpi slt, %141, %10 : vector<8x1xi32>
    %143 = vector.shape_cast %142 : vector<8x1xi1> to vector<8x1xi1>
    %144 = vector.broadcast %143 : vector<8x1xi1> to vector<8x128xi1>
    %145 = arith.select %144, %139, %98 : vector<8x128xi1>, vector<8x128xf32>
    %146 = vector.shape_cast %142 : vector<8x1xi1> to vector<8x1xi1>
    %147 = vector.broadcast %146 : vector<8x1xi1> to vector<8x128xi1>
    %148 = arith.select %147, %137, %101 : vector<8x128xi1>, vector<8x128xf32>
    %cst_43 = arith.constant 0.000000e+00 : f32
    %149 = vector.shape_cast %142 : vector<8x1xi1> to vector<8x1xi1>
    %150 = vector.broadcast %149 : vector<8x1xi1> to vector<8x128xi1>
    %151 = vector.broadcast %cst_43 : f32 to vector<8x128xf32>
    %152 = arith.select %150, %139, %151 : vector<8x128xi1>, vector<8x128xf32>
    %153 = arith.index_cast %109 : i32 to index
    %c0_44 = arith.constant 0 : index
    %154 = vector.load %arg14[%153, %c0_44] : memref<64x128xf32, #tpu.memory_space<vmem>>, vector<8x128xf32>
    tpu.vector_store %arg14[%153, %c0_44], %152 {strides = array<i32>} : memref<64x128xf32, #tpu.memory_space<vmem>>, vector<8x128xf32>,
    %c3_i32 = arith.constant 3 : i32
    %c8_i32_45 = arith.constant 8 : i32
    %155 = arith.muli %c3_i32, %c8_i32_45 : i32
    %156 = tpu.assume_multiple %155, 8 : i32
    %157 = arith.index_cast %156 : i32 to index
    %c0_46 = arith.constant 0 : index
    %158 = vector.load %arg13[%157, %c0_46] : memref<64x512xf32, #tpu.memory_space<vmem>>, vector<8x512xf32>
    %c0_47 = arith.constant 0 : index
    %c0_48 = arith.constant 0 : index
    %159 = vector.load %arg6[%c0_47, %c0_48] : memref<128x512xf32, #tpu.memory_space<vmem>>, vector<128x512xf32>
    %cst_49 = arith.constant dense<0.000000e+00> : vector<8x512xf32>
    %160 = tpu.matmul %145, %159, %cst_49 {dimension_numbers = #tpu.dot_dimension_numbers<[1], [0], [0], [1], [0, 0, 1, 1], [], []>} : vector<8x128xf32>, vector<128x512xf32>, vector<8x512xf32> -> vector<8x512xf32>
    %161 = arith.addf %158, %160 : vector<8x512xf32>
    %162 = vector.extract_strided_slice %161 {offsets = [0, 0], sizes = [8, 128], strides = [1, 1]} : vector<8x512xf32> to vector<8x128xf32>
    %163 = arith.negf %162 : vector<8x128xf32>
    %164 = math.exp %163 : vector<8x128xf32>
    %cst_50 = arith.constant 1.000000e+00 : f32
    %165 = vector.broadcast %cst_50 : f32 to vector<8x128xf32>
    %166 = arith.addf %165, %164 : vector<8x128xf32>
    %167 = arith.divf %165, %166 : vector<8x128xf32>
    %168 = vector.extract_strided_slice %161 {offsets = [0, 128], sizes = [8, 128], strides = [1, 1]} : vector<8x512xf32> to vector<8x128xf32>
    %169 = arith.negf %168 : vector<8x128xf32>
    %170 = math.exp %169 : vector<8x128xf32>
    %cst_51 = arith.constant 1.000000e+00 : f32
    %171 = vector.broadcast %cst_51 : f32 to vector<8x128xf32>
    %172 = arith.addf %171, %170 : vector<8x128xf32>
    %173 = arith.divf %171, %172 : vector<8x128xf32>
    %174 = vector.extract_strided_slice %161 {offsets = [0, 256], sizes = [8, 128], strides = [1, 1]} : vector<8x512xf32> to vector<8x128xf32>
    %175 = math.tanh %174 : vector<8x128xf32>
    %176 = vector.extract_strided_slice %161 {offsets = [0, 384], sizes = [8, 128], strides = [1, 1]} : vector<8x512xf32> to vector<8x128xf32>
    %177 = arith.negf %176 : vector<8x128xf32>
    %178 = math.exp %177 : vector<8x128xf32>
    %cst_52 = arith.constant 1.000000e+00 : f32
    %179 = vector.broadcast %cst_52 : f32 to vector<8x128xf32>
    %180 = arith.addf %179, %178 : vector<8x128xf32>
    %181 = arith.divf %179, %180 : vector<8x128xf32>
    %182 = arith.mulf %173, %148 : vector<8x128xf32>
    %183 = arith.mulf %167, %175 : vector<8x128xf32>
    %184 = arith.addf %182, %183 : vector<8x128xf32>
    %185 = math.tanh %184 : vector<8x128xf32>
    %186 = arith.mulf %181, %185 : vector<8x128xf32>
    %187 = arith.addi %11, %c3_i32 : i32
    %188 = vector.broadcast %187 : i32 to vector<8x1xi32>
    %189 = arith.cmpi slt, %188, %10 : vector<8x1xi32>
    %190 = vector.shape_cast %189 : vector<8x1xi1> to vector<8x1xi1>
    %191 = vector.broadcast %190 : vector<8x1xi1> to vector<8x128xi1>
    %192 = arith.select %191, %186, %145 : vector<8x128xi1>, vector<8x128xf32>
    %193 = vector.shape_cast %189 : vector<8x1xi1> to vector<8x1xi1>
    %194 = vector.broadcast %193 : vector<8x1xi1> to vector<8x128xi1>
    %195 = arith.select %194, %184, %148 : vector<8x128xi1>, vector<8x128xf32>
    %cst_53 = arith.constant 0.000000e+00 : f32
    %196 = vector.shape_cast %189 : vector<8x1xi1> to vector<8x1xi1>
    %197 = vector.broadcast %196 : vector<8x1xi1> to vector<8x128xi1>
    %198 = vector.broadcast %cst_53 : f32 to vector<8x128xf32>
    %199 = arith.select %197, %186, %198 : vector<8x128xi1>, vector<8x128xf32>
    %200 = arith.index_cast %156 : i32 to index
    %c0_54 = arith.constant 0 : index
    %201 = vector.load %arg14[%200, %c0_54] : memref<64x128xf32, #tpu.memory_space<vmem>>, vector<8x128xf32>
    tpu.vector_store %arg14[%200, %c0_54], %199 {strides = array<i32>} : memref<64x128xf32, #tpu.memory_space<vmem>>, vector<8x128xf32>,
    %c4_i32 = arith.constant 4 : i32
    %c8_i32_55 = arith.constant 8 : i32
    %202 = arith.muli %c4_i32, %c8_i32_55 : i32
    %203 = tpu.assume_multiple %202, 8 : i32
    %204 = arith.index_cast %203 : i32 to index
    %c0_56 = arith.constant 0 : index
    %205 = vector.load %arg13[%204, %c0_56] : memref<64x512xf32, #tpu.memory_space<vmem>>, vector<8x512xf32>
    %c0_57 = arith.constant 0 : index
    %c0_58 = arith.constant 0 : index
    %206 = vector.load %arg6[%c0_57, %c0_58] : memref<128x512xf32, #tpu.memory_space<vmem>>, vector<128x512xf32>
    %cst_59 = arith.constant dense<0.000000e+00> : vector<8x512xf32>
    %207 = tpu.matmul %192, %206, %cst_59 {dimension_numbers = #tpu.dot_dimension_numbers<[1], [0], [0], [1], [0, 0, 1, 1], [], []>} : vector<8x128xf32>, vector<128x512xf32>, vector<8x512xf32> -> vector<8x512xf32>
    %208 = arith.addf %205, %207 : vector<8x512xf32>
    %209 = vector.extract_strided_slice %208 {offsets = [0, 0], sizes = [8, 128], strides = [1, 1]} : vector<8x512xf32> to vector<8x128xf32>
    %210 = arith.negf %209 : vector<8x128xf32>
    %211 = math.exp %210 : vector<8x128xf32>
    %cst_60 = arith.constant 1.000000e+00 : f32
    %212 = vector.broadcast %cst_60 : f32 to vector<8x128xf32>
    %213 = arith.addf %212, %211 : vector<8x128xf32>
    %214 = arith.divf %212, %213 : vector<8x128xf32>
    %215 = vector.extract_strided_slice %208 {offsets = [0, 128], sizes = [8, 128], strides = [1, 1]} : vector<8x512xf32> to vector<8x128xf32>
    %216 = arith.negf %215 : vector<8x128xf32>
    %217 = math.exp %216 : vector<8x128xf32>
    %cst_61 = arith.constant 1.000000e+00 : f32
    %218 = vector.broadcast %cst_61 : f32 to vector<8x128xf32>
    %219 = arith.addf %218, %217 : vector<8x128xf32>
    %220 = arith.divf %218, %219 : vector<8x128xf32>
    %221 = vector.extract_strided_slice %208 {offsets = [0, 256], sizes = [8, 128], strides = [1, 1]} : vector<8x512xf32> to vector<8x128xf32>
    %222 = math.tanh %221 : vector<8x128xf32>
    %223 = vector.extract_strided_slice %208 {offsets = [0, 384], sizes = [8, 128], strides = [1, 1]} : vector<8x512xf32> to vector<8x128xf32>
    %224 = arith.negf %223 : vector<8x128xf32>
    %225 = math.exp %224 : vector<8x128xf32>
    %cst_62 = arith.constant 1.000000e+00 : f32
    %226 = vector.broadcast %cst_62 : f32 to vector<8x128xf32>
    %227 = arith.addf %226, %225 : vector<8x128xf32>
    %228 = arith.divf %226, %227 : vector<8x128xf32>
    %229 = arith.mulf %220, %195 : vector<8x128xf32>
    %230 = arith.mulf %214, %222 : vector<8x128xf32>
    %231 = arith.addf %229, %230 : vector<8x128xf32>
    %232 = math.tanh %231 : vector<8x128xf32>
    %233 = arith.mulf %228, %232 : vector<8x128xf32>
    %234 = arith.addi %11, %c4_i32 : i32
    %235 = vector.broadcast %234 : i32 to vector<8x1xi32>
    %236 = arith.cmpi slt, %235, %10 : vector<8x1xi32>
    %237 = vector.shape_cast %236 : vector<8x1xi1> to vector<8x1xi1>
    %238 = vector.broadcast %237 : vector<8x1xi1> to vector<8x128xi1>
    %239 = arith.select %238, %233, %192 : vector<8x128xi1>, vector<8x128xf32>
    %240 = vector.shape_cast %236 : vector<8x1xi1> to vector<8x1xi1>
    %241 = vector.broadcast %240 : vector<8x1xi1> to vector<8x128xi1>
    %242 = arith.select %241, %231, %195 : vector<8x128xi1>, vector<8x128xf32>
    %cst_63 = arith.constant 0.000000e+00 : f32
    %243 = vector.shape_cast %236 : vector<8x1xi1> to vector<8x1xi1>
    %244 = vector.broadcast %243 : vector<8x1xi1> to vector<8x128xi1>
    %245 = vector.broadcast %cst_63 : f32 to vector<8x128xf32>
    %246 = arith.select %244, %233, %245 : vector<8x128xi1>, vector<8x128xf32>
    %247 = arith.index_cast %203 : i32 to index
    %c0_64 = arith.constant 0 : index
    %248 = vector.load %arg14[%247, %c0_64] : memref<64x128xf32, #tpu.memory_space<vmem>>, vector<8x128xf32>
    tpu.vector_store %arg14[%247, %c0_64], %246 {strides = array<i32>} : memref<64x128xf32, #tpu.memory_space<vmem>>, vector<8x128xf32>,
    %c5_i32 = arith.constant 5 : i32
    %c8_i32_65 = arith.constant 8 : i32
    %249 = arith.muli %c5_i32, %c8_i32_65 : i32
    %250 = tpu.assume_multiple %249, 8 : i32
    %251 = arith.index_cast %250 : i32 to index
    %c0_66 = arith.constant 0 : index
    %252 = vector.load %arg13[%251, %c0_66] : memref<64x512xf32, #tpu.memory_space<vmem>>, vector<8x512xf32>
    %c0_67 = arith.constant 0 : index
    %c0_68 = arith.constant 0 : index
    %253 = vector.load %arg6[%c0_67, %c0_68] : memref<128x512xf32, #tpu.memory_space<vmem>>, vector<128x512xf32>
    %cst_69 = arith.constant dense<0.000000e+00> : vector<8x512xf32>
    %254 = tpu.matmul %239, %253, %cst_69 {dimension_numbers = #tpu.dot_dimension_numbers<[1], [0], [0], [1], [0, 0, 1, 1], [], []>} : vector<8x128xf32>, vector<128x512xf32>, vector<8x512xf32> -> vector<8x512xf32>
    %255 = arith.addf %252, %254 : vector<8x512xf32>
    %256 = vector.extract_strided_slice %255 {offsets = [0, 0], sizes = [8, 128], strides = [1, 1]} : vector<8x512xf32> to vector<8x128xf32>
    %257 = arith.negf %256 : vector<8x128xf32>
    %258 = math.exp %257 : vector<8x128xf32>
    %cst_70 = arith.constant 1.000000e+00 : f32
    %259 = vector.broadcast %cst_70 : f32 to vector<8x128xf32>
    %260 = arith.addf %259, %258 : vector<8x128xf32>
    %261 = arith.divf %259, %260 : vector<8x128xf32>
    %262 = vector.extract_strided_slice %255 {offsets = [0, 128], sizes = [8, 128], strides = [1, 1]} : vector<8x512xf32> to vector<8x128xf32>
    %263 = arith.negf %262 : vector<8x128xf32>
    %264 = math.exp %263 : vector<8x128xf32>
    %cst_71 = arith.constant 1.000000e+00 : f32
    %265 = vector.broadcast %cst_71 : f32 to vector<8x128xf32>
    %266 = arith.addf %265, %264 : vector<8x128xf32>
    %267 = arith.divf %265, %266 : vector<8x128xf32>
    %268 = vector.extract_strided_slice %255 {offsets = [0, 256], sizes = [8, 128], strides = [1, 1]} : vector<8x512xf32> to vector<8x128xf32>
    %269 = math.tanh %268 : vector<8x128xf32>
    %270 = vector.extract_strided_slice %255 {offsets = [0, 384], sizes = [8, 128], strides = [1, 1]} : vector<8x512xf32> to vector<8x128xf32>
    %271 = arith.negf %270 : vector<8x128xf32>
    %272 = math.exp %271 : vector<8x128xf32>
    %cst_72 = arith.constant 1.000000e+00 : f32
    %273 = vector.broadcast %cst_72 : f32 to vector<8x128xf32>
    %274 = arith.addf %273, %272 : vector<8x128xf32>
    %275 = arith.divf %273, %274 : vector<8x128xf32>
    %276 = arith.mulf %267, %242 : vector<8x128xf32>
    %277 = arith.mulf %261, %269 : vector<8x128xf32>
    %278 = arith.addf %276, %277 : vector<8x128xf32>
    %279 = math.tanh %278 : vector<8x128xf32>
    %280 = arith.mulf %275, %279 : vector<8x128xf32>
    %281 = arith.addi %11, %c5_i32 : i32
    %282 = vector.broadcast %281 : i32 to vector<8x1xi32>
    %283 = arith.cmpi slt, %282, %10 : vector<8x1xi32>
    %284 = vector.shape_cast %283 : vector<8x1xi1> to vector<8x1xi1>
    %285 = vector.broadcast %284 : vector<8x1xi1> to vector<8x128xi1>
    %286 = arith.select %285, %280, %239 : vector<8x128xi1>, vector<8x128xf32>
    %287 = vector.shape_cast %283 : vector<8x1xi1> to vector<8x1xi1>
    %288 = vector.broadcast %287 : vector<8x1xi1> to vector<8x128xi1>
    %289 = arith.select %288, %278, %242 : vector<8x128xi1>, vector<8x128xf32>
    %cst_73 = arith.constant 0.000000e+00 : f32
    %290 = vector.shape_cast %283 : vector<8x1xi1> to vector<8x1xi1>
    %291 = vector.broadcast %290 : vector<8x1xi1> to vector<8x128xi1>
    %292 = vector.broadcast %cst_73 : f32 to vector<8x128xf32>
    %293 = arith.select %291, %280, %292 : vector<8x128xi1>, vector<8x128xf32>
    %294 = arith.index_cast %250 : i32 to index
    %c0_74 = arith.constant 0 : index
    %295 = vector.load %arg14[%294, %c0_74] : memref<64x128xf32, #tpu.memory_space<vmem>>, vector<8x128xf32>
    tpu.vector_store %arg14[%294, %c0_74], %293 {strides = array<i32>} : memref<64x128xf32, #tpu.memory_space<vmem>>, vector<8x128xf32>,
    %c6_i32 = arith.constant 6 : i32
    %c8_i32_75 = arith.constant 8 : i32
    %296 = arith.muli %c6_i32, %c8_i32_75 : i32
    %297 = tpu.assume_multiple %296, 8 : i32
    %298 = arith.index_cast %297 : i32 to index
    %c0_76 = arith.constant 0 : index
    %299 = vector.load %arg13[%298, %c0_76] : memref<64x512xf32, #tpu.memory_space<vmem>>, vector<8x512xf32>
    %c0_77 = arith.constant 0 : index
    %c0_78 = arith.constant 0 : index
    %300 = vector.load %arg6[%c0_77, %c0_78] : memref<128x512xf32, #tpu.memory_space<vmem>>, vector<128x512xf32>
    %cst_79 = arith.constant dense<0.000000e+00> : vector<8x512xf32>
    %301 = tpu.matmul %286, %300, %cst_79 {dimension_numbers = #tpu.dot_dimension_numbers<[1], [0], [0], [1], [0, 0, 1, 1], [], []>} : vector<8x128xf32>, vector<128x512xf32>, vector<8x512xf32> -> vector<8x512xf32>
    %302 = arith.addf %299, %301 : vector<8x512xf32>
    %303 = vector.extract_strided_slice %302 {offsets = [0, 0], sizes = [8, 128], strides = [1, 1]} : vector<8x512xf32> to vector<8x128xf32>
    %304 = arith.negf %303 : vector<8x128xf32>
    %305 = math.exp %304 : vector<8x128xf32>
    %cst_80 = arith.constant 1.000000e+00 : f32
    %306 = vector.broadcast %cst_80 : f32 to vector<8x128xf32>
    %307 = arith.addf %306, %305 : vector<8x128xf32>
    %308 = arith.divf %306, %307 : vector<8x128xf32>
    %309 = vector.extract_strided_slice %302 {offsets = [0, 128], sizes = [8, 128], strides = [1, 1]} : vector<8x512xf32> to vector<8x128xf32>
    %310 = arith.negf %309 : vector<8x128xf32>
    %311 = math.exp %310 : vector<8x128xf32>
    %cst_81 = arith.constant 1.000000e+00 : f32
    %312 = vector.broadcast %cst_81 : f32 to vector<8x128xf32>
    %313 = arith.addf %312, %311 : vector<8x128xf32>
    %314 = arith.divf %312, %313 : vector<8x128xf32>
    %315 = vector.extract_strided_slice %302 {offsets = [0, 256], sizes = [8, 128], strides = [1, 1]} : vector<8x512xf32> to vector<8x128xf32>
    %316 = math.tanh %315 : vector<8x128xf32>
    %317 = vector.extract_strided_slice %302 {offsets = [0, 384], sizes = [8, 128], strides = [1, 1]} : vector<8x512xf32> to vector<8x128xf32>
    %318 = arith.negf %317 : vector<8x128xf32>
    %319 = math.exp %318 : vector<8x128xf32>
    %cst_82 = arith.constant 1.000000e+00 : f32
    %320 = vector.broadcast %cst_82 : f32 to vector<8x128xf32>
    %321 = arith.addf %320, %319 : vector<8x128xf32>
    %322 = arith.divf %320, %321 : vector<8x128xf32>
    %323 = arith.mulf %314, %289 : vector<8x128xf32>
    %324 = arith.mulf %308, %316 : vector<8x128xf32>
    %325 = arith.addf %323, %324 : vector<8x128xf32>
    %326 = math.tanh %325 : vector<8x128xf32>
    %327 = arith.mulf %322, %326 : vector<8x128xf32>
    %328 = arith.addi %11, %c6_i32 : i32
    %329 = vector.broadcast %328 : i32 to vector<8x1xi32>
    %330 = arith.cmpi slt, %329, %10 : vector<8x1xi32>
    %331 = vector.shape_cast %330 : vector<8x1xi1> to vector<8x1xi1>
    %332 = vector.broadcast %331 : vector<8x1xi1> to vector<8x128xi1>
    %333 = arith.select %332, %327, %286 : vector<8x128xi1>, vector<8x128xf32>
    %334 = vector.shape_cast %330 : vector<8x1xi1> to vector<8x1xi1>
    %335 = vector.broadcast %334 : vector<8x1xi1> to vector<8x128xi1>
    %336 = arith.select %335, %325, %289 : vector<8x128xi1>, vector<8x128xf32>
    %cst_83 = arith.constant 0.000000e+00 : f32
    %337 = vector.shape_cast %330 : vector<8x1xi1> to vector<8x1xi1>
    %338 = vector.broadcast %337 : vector<8x1xi1> to vector<8x128xi1>
    %339 = vector.broadcast %cst_83 : f32 to vector<8x128xf32>
    %340 = arith.select %338, %327, %339 : vector<8x128xi1>, vector<8x128xf32>
    %341 = arith.index_cast %297 : i32 to index
    %c0_84 = arith.constant 0 : index
    %342 = vector.load %arg14[%341, %c0_84] : memref<64x128xf32, #tpu.memory_space<vmem>>, vector<8x128xf32>
    tpu.vector_store %arg14[%341, %c0_84], %340 {strides = array<i32>} : memref<64x128xf32, #tpu.memory_space<vmem>>, vector<8x128xf32>,
    %c7_i32 = arith.constant 7 : i32
    %c8_i32_85 = arith.constant 8 : i32
    %343 = arith.muli %c7_i32, %c8_i32_85 : i32
    %344 = tpu.assume_multiple %343, 8 : i32
    %345 = arith.index_cast %344 : i32 to index
    %c0_86 = arith.constant 0 : index
    %346 = vector.load %arg13[%345, %c0_86] : memref<64x512xf32, #tpu.memory_space<vmem>>, vector<8x512xf32>
    %c0_87 = arith.constant 0 : index
    %c0_88 = arith.constant 0 : index
    %347 = vector.load %arg6[%c0_87, %c0_88] : memref<128x512xf32, #tpu.memory_space<vmem>>, vector<128x512xf32>
    %cst_89 = arith.constant dense<0.000000e+00> : vector<8x512xf32>
    %348 = tpu.matmul %333, %347, %cst_89 {dimension_numbers = #tpu.dot_dimension_numbers<[1], [0], [0], [1], [0, 0, 1, 1], [], []>} : vector<8x128xf32>, vector<128x512xf32>, vector<8x512xf32> -> vector<8x512xf32>
    %349 = arith.addf %346, %348 : vector<8x512xf32>
    %350 = vector.extract_strided_slice %349 {offsets = [0, 0], sizes = [8, 128], strides = [1, 1]} : vector<8x512xf32> to vector<8x128xf32>
    %351 = arith.negf %350 : vector<8x128xf32>
    %352 = math.exp %351 : vector<8x128xf32>
    %cst_90 = arith.constant 1.000000e+00 : f32
    %353 = vector.broadcast %cst_90 : f32 to vector<8x128xf32>
    %354 = arith.addf %353, %352 : vector<8x128xf32>
    %355 = arith.divf %353, %354 : vector<8x128xf32>
    %356 = vector.extract_strided_slice %349 {offsets = [0, 128], sizes = [8, 128], strides = [1, 1]} : vector<8x512xf32> to vector<8x128xf32>
    %357 = arith.negf %356 : vector<8x128xf32>
    %358 = math.exp %357 : vector<8x128xf32>
    %cst_91 = arith.constant 1.000000e+00 : f32
    %359 = vector.broadcast %cst_91 : f32 to vector<8x128xf32>
    %360 = arith.addf %359, %358 : vector<8x128xf32>
    %361 = arith.divf %359, %360 : vector<8x128xf32>
    %362 = vector.extract_strided_slice %349 {offsets = [0, 256], sizes = [8, 128], strides = [1, 1]} : vector<8x512xf32> to vector<8x128xf32>
    %363 = math.tanh %362 : vector<8x128xf32>
    %364 = vector.extract_strided_slice %349 {offsets = [0, 384], sizes = [8, 128], strides = [1, 1]} : vector<8x512xf32> to vector<8x128xf32>
    %365 = arith.negf %364 : vector<8x128xf32>
    %366 = math.exp %365 : vector<8x128xf32>
    %cst_92 = arith.constant 1.000000e+00 : f32
    %367 = vector.broadcast %cst_92 : f32 to vector<8x128xf32>
    %368 = arith.addf %367, %366 : vector<8x128xf32>
    %369 = arith.divf %367, %368 : vector<8x128xf32>
    %370 = arith.mulf %361, %336 : vector<8x128xf32>
    %371 = arith.mulf %355, %363 : vector<8x128xf32>
    %372 = arith.addf %370, %371 : vector<8x128xf32>
    %373 = math.tanh %372 : vector<8x128xf32>
    %374 = arith.mulf %369, %373 : vector<8x128xf32>
    %375 = arith.addi %11, %c7_i32 : i32
    %376 = vector.broadcast %375 : i32 to vector<8x1xi32>
    %377 = arith.cmpi slt, %376, %10 : vector<8x1xi32>
    %378 = vector.shape_cast %377 : vector<8x1xi1> to vector<8x1xi1>
    %379 = vector.broadcast %378 : vector<8x1xi1> to vector<8x128xi1>
    %380 = arith.select %379, %374, %333 : vector<8x128xi1>, vector<8x128xf32>
    %381 = vector.shape_cast %377 : vector<8x1xi1> to vector<8x1xi1>
    %382 = vector.broadcast %381 : vector<8x1xi1> to vector<8x128xi1>
    %383 = arith.select %382, %372, %336 : vector<8x128xi1>, vector<8x128xf32>
    %cst_93 = arith.constant 0.000000e+00 : f32
    %384 = vector.shape_cast %377 : vector<8x1xi1> to vector<8x1xi1>
    %385 = vector.broadcast %384 : vector<8x1xi1> to vector<8x128xi1>
    %386 = vector.broadcast %cst_93 : f32 to vector<8x128xf32>
    %387 = arith.select %385, %374, %386 : vector<8x128xi1>, vector<8x128xf32>
    %388 = arith.index_cast %344 : i32 to index
    %c0_94 = arith.constant 0 : index
    %389 = vector.load %arg14[%388, %c0_94] : memref<64x128xf32, #tpu.memory_space<vmem>>, vector<8x128xf32>
    tpu.vector_store %arg14[%388, %c0_94], %387 {strides = array<i32>} : memref<64x128xf32, #tpu.memory_space<vmem>>, vector<8x128xf32>,
    %c8_i32_95 = arith.constant 8 : i32
    %c0_96 = arith.constant 0 : index
    %c0_97 = arith.constant 0 : index
    %390 = vector.load %arg15[%c0_96, %c0_97] : memref<8x128xf32, #tpu.memory_space<vmem>>, vector<8x128xf32>
    tpu.vector_store %arg15[%c0_96, %c0_97], %380 {strides = array<i32>} : memref<8x128xf32, #tpu.memory_space<vmem>>, vector<8x128xf32>,
    %c0_98 = arith.constant 0 : index
    %c0_99 = arith.constant 0 : index
    %391 = vector.load %arg16[%c0_98, %c0_99] : memref<8x128xf32, #tpu.memory_space<vmem>>, vector<8x128xf32>
    tpu.vector_store %arg16[%c0_98, %c0_99], %383 {strides = array<i32>} : memref<8x128xf32, #tpu.memory_space<vmem>>, vector<8x128xf32>,
    %c0_100 = arith.constant 0 : index
    %c0_101 = arith.constant 0 : index
    %392 = vector.load %arg14[%c0_100, %c0_101] : memref<64x128xf32, #tpu.memory_space<vmem>>, vector<64x128xf32>
    %c0_102 = arith.constant 0 : index
    %c0_103 = arith.constant 0 : index
    %393 = vector.load %arg8[%c0_102, %c0_103] : memref<128x128xf32, #tpu.memory_space<vmem>>, vector<128x128xf32>
    %cst_104 = arith.constant dense<0.000000e+00> : vector<64x128xf32>
    %394 = tpu.matmul %392, %393, %cst_104 {dimension_numbers = #tpu.dot_dimension_numbers<[1], [0], [0], [1], [0, 0, 1, 1], [], []>} : vector<64x128xf32>, vector<128x128xf32>, vector<64x128xf32> -> vector<64x128xf32>
    %c0_105 = arith.constant 0 : index
    %c0_106 = arith.constant 0 : index
    %395 = vector.load %arg9[%c0_105, %c0_106] : memref<1x128xf32, #tpu.memory_space<vmem>>, vector<1x128xf32>
    %396 = vector.broadcast %395 : vector<1x128xf32> to vector<64x128xf32>
    %397 = arith.addf %394, %396 : vector<64x128xf32>
    %c0_107 = arith.constant 0 : index
    %c0_108 = arith.constant 0 : index
    %398 = vector.load %arg10[%c0_107, %c0_108] : memref<64x128xf32, #tpu.memory_space<vmem>>, vector<64x128xf32>
    tpu.vector_store %arg10[%c0_107, %c0_108], %397 {strides = array<i32>} : memref<64x128xf32, #tpu.memory_space<vmem>>, vector<64x128xf32>,
    %c0_i32_109 = arith.constant 0 : i32
    %399 = arith.cmpi eq, %arg0, %c0_i32_109 : i32
    %400 = arith.extui %399 : i1 to i32
    %c0_i32_110 = arith.constant 0 : i32
    %401 = arith.cmpi ne, %400, %c0_i32_110 : i32
    scf.if %401 {
      %c0_111 = arith.constant 0 : index
      %c0_112 = arith.constant 0 : index
      %402 = vector.load %arg11[%c0_111, %c0_112] : memref<8x128xf32, #tpu.memory_space<vmem>>, vector<8x128xf32>
      tpu.vector_store %arg11[%c0_111, %c0_112], %380 {strides = array<i32>} : memref<8x128xf32, #tpu.memory_space<vmem>>, vector<8x128xf32>,
      %c0_113 = arith.constant 0 : index
      %c0_114 = arith.constant 0 : index
      %403 = vector.load %arg12[%c0_113, %c0_114] : memref<8x128xf32, #tpu.memory_space<vmem>>, vector<8x128xf32>
      tpu.vector_store %arg12[%c0_113, %c0_114], %383 {strides = array<i32>} : memref<8x128xf32, #tpu.memory_space<vmem>>, vector<8x128xf32>,
    } else {
    }
    return
  }
  func.func @transform_0(%arg0: i32) -> (i32, i32) {
    %c0_i32 = arith.constant 0 : i32
    %c0_i32_0 = arith.constant 0 : i32
    %c0_i32_1 = arith.constant 0 : i32
    return %c0_i32, %c0_i32_0 : i32, i32
  }
  func.func @transform_1(%arg0: i32) -> (i32, i32) {
    %c0_i32 = arith.constant 0 : i32
    %c0_i32_0 = arith.constant 0 : i32
    return %arg0, %c0_i32 : i32, i32
  }
  func.func @transform_2(%arg0: i32) -> (i32, i32) {
    %c0_i32 = arith.constant 0 : i32
    %c0_i32_0 = arith.constant 0 : i32
    %c0_i32_1 = arith.constant 0 : i32
    return %c0_i32, %c0_i32_0 : i32, i32
  }
  func.func @transform_3(%arg0: i32) -> (i32, i32) {
    %c0_i32 = arith.constant 0 : i32
    %c0_i32_0 = arith.constant 0 : i32
    %c0_i32_1 = arith.constant 0 : i32
    return %c0_i32, %c0_i32_0 : i32, i32
  }
  func.func @transform_4(%arg0: i32) -> (i32, i32) {
    %c0_i32 = arith.constant 0 : i32
    %c0_i32_0 = arith.constant 0 : i32
    %c0_i32_1 = arith.constant 0 : i32
    return %c0_i32, %c0_i32_0 : i32, i32
  }
  func.func @transform_5(%arg0: i32) -> (i32, i32) {
    %c0_i32 = arith.constant 0 : i32
    %c0_i32_0 = arith.constant 0 : i32
    %c0_i32_1 = arith.constant 0 : i32
    return %c0_i32, %c0_i32_0 : i32, i32
  }
  func.func @transform_6(%arg0: i32) -> (i32, i32) {
    %c0_i32 = arith.constant 0 : i32
    %c0_i32_0 = arith.constant 0 : i32
    %c0_i32_1 = arith.constant 0 : i32
    return %c0_i32, %c0_i32_0 : i32, i32
  }
  func.func @transform_7(%arg0: i32) -> (i32, i32) {
    %c0_i32 = arith.constant 0 : i32
    %c0_i32_0 = arith.constant 0 : i32
    %c0_i32_1 = arith.constant 0 : i32
    return %c0_i32, %c0_i32_0 : i32, i32
  }
  func.func @transform_8(%arg0: i32) -> (i32, i32) {
    %c0_i32 = arith.constant 0 : i32
    %c0_i32_0 = arith.constant 0 : i32
    %c0_i32_1 = arith.constant 0 : i32
    return %c0_i32, %c0_i32_0 : i32, i32
  }
  func.func @transform_9(%arg0: i32) -> (i32, i32) {
    %c0_i32 = arith.constant 0 : i32
    %c0_i32_0 = arith.constant 0 : i32
    return %arg0, %c0_i32 : i32, i32
  }
  func.func @transform_10(%arg0: i32) -> (i32, i32) {
    %c0_i32 = arith.constant 0 : i32
    %c0_i32_0 = arith.constant 0 : i32
    %c0_i32_1 = arith.constant 0 : i32
    return %c0_i32, %c0_i32_0 : i32, i32
  }
  func.func @transform_11(%arg0: i32) -> (i32, i32) {
    %c0_i32 = arith.constant 0 : i32
    %c0_i32_0 = arith.constant 0 : i32
    %c0_i32_1 = arith.constant 0 : i32
    return %c0_i32, %c0_i32_0 : i32, i32
  }
}

</mosaic_0001>

<bundles_post_ra>
// kernel: rnn_decoder_fast.1
= control target key start
LH: loop header
LB: loop body
LE: loop exit
PB: predicated region body
PF: predicated region fallthrough
CT: control target
= control target key end

     0   :  { %v3441_v3 = vmov 0.0   ;;  %v3442_v7 = vmov 0   ;;  %vm81_vm0 = vcmask 130048   ;;  %s4820_s4 = inlined_call_operand.vmem [shape: f32[16,512], index: 4, kind: input, shape index: {}]   ;;  %s4821_s5 = inlined_call_operand.vmem [shape: f32[128,512], index: 5, kind: input, shape index: {}]   ;;  %s4822_s1 = inlined_call_operand.vmem [shape: f32[64,16], index: 1, kind: input, shape index: {}]   ;;  %s4823_s0 = inlined_call_operand.vmem [shape: s32[8,1], index: 0, kind: input, shape index: {}]   ;;  %s4824_s2 = inlined_call_operand.vmem [shape: f32[8,128], index: 2, kind: input, shape index: {}]   ;;  %s4825_s6 = inlined_call_operand.vmem [shape: f32[1,512], index: 6, kind: input, shape index: {}]   ;;  %s4826_s3 = inlined_call_operand.vmem [shape: f32[8,128], index: 3, kind: input, shape index: {}]   ;;  %s4827_s7 = inlined_call_operand.vmem [shape: f32[128,128], index: 7, kind: input, shape index: {}]   ;;  %s4828_s8 = inlined_call_operand.vmem [shape: f32[1,128], index: 8, kind: input, shape index: {}]   ;;  %s4829_s11 = inlined_call_operand.vmem [shape: f32[8,128], index: 11, kind: output, shape index: {2}]   ;;  %s4830_s9 = inlined_call_operand.vmem [shape: f32[64,128], index: 9, kind: output, shape index: {0}]   ;;  %s4831_s10 = inlined_call_operand.vmem [shape: f32[8,128], index: 10, kind: output, shape index: {1}]  }
   0x1   :  { %v54_v0 = vld [vmem:[%s4820_s4 + $0x18] sm:$0xff]  ;;  %v53_v2 = vld [vmem:[%s4820_s4 + $0x10] sm:$0xff]  ;;  %283 = vmatprep.mubr.f32.mxu1 %v3441_v3  ;;  %170 = vmatprep.mubr.f32.mxu0 %v3441_v3  ;;  %v376_v6 = vld [vmem:[%s4821_s5 + $0x8] sm:$0xff] }
   0x2   :  { %v58_v1 = vld [vmem:[%s4820_s4 + $0x38] sm:$0xff]  ;;  %v57_v5 = vld [vmem:[%s4820_s4 + $0x30] sm:$0xff]  ;;  %3311 = vset.pattern.permute.xlu0 %v3442_v7  ;;  %3312 = vset.pattern.permute.xlu1 %v3442_v7  ;;  %v380_v9 = vld [vmem:[%s4821_s5 + $0x28] sm:$0xff] }
   0x3   :  { %v2697_v4 = vpack.c.bf16 %v58_v1, %v54_v0  ;;  %v2699_v8 = vpack.c.bf16 %v57_v5, %v53_v2  ;;  %v375_v10 = vld [vmem:[%s4821_s5] sm:$0xff]  ;;  %v3531_v12 = vpack.c.bf16 %v380_v9, %v376_v6  ;;  %v384_v13 = vld [vmem:[%s4821_s5 + $0x48] sm:$0xff]  ;;  %v3591_v29 = vld [vmem:[%s4822_s1 + $0x10] sm:$0xff] }
   0x4   :  { %v379_v11 = vld [vmem:[%s4821_s5 + $0x20] sm:$0xff]  ;;  %v388_v14 = vld [vmem:[%s4821_s5 + $0x68] sm:$0xff]  ;;  %v3629_v42 = vld [vmem:[%s4822_s1 + $0x18] sm:$0xff] }
   0x5   :  { %2698 = vmatprep.subr.bf16.mxu1 %v2697_v4  ;;  %v43_v15 = vld [vmem:[%s4822_s1] sm:$0xff]  ;;  %v3542_v16 = vpack.c.bf16 %v379_v11, %v375_v10  ;;  %v3545_v17 = vpack.c.bf16 %v388_v14, %v384_v13  ;;  %v392_v20 = vld [vmem:[%s4821_s5 + $0x88] sm:$0xff]  ;;  %v3722_v0 = vld [vmem:[%s4822_s1 + $0x30] sm:$0xff] }
   0x6   :  { %2700 = vmatpush1.bf16.msra.mxu1 %v2699_v8  ;;  %v383_v18 = vld [vmem:[%s4821_s5 + $0x40] sm:$0xff]  ;;  %v396_v21 = vld [vmem:[%s4821_s5 + $0xa8] sm:$0xff]  ;;  %v378_v8 = vld [vmem:[%s4821_s5 + $0x18] sm:$0xff] }
   0x7   :  { %2702 = vmatprep.subr.bf16.mxu1 %v3531_v12  ;;  %v387_v19 = vld [vmem:[%s4821_s5 + $0x60] sm:$0xff]  ;;  %v3565_v22 = vld [vmem:[%s4822_s1 + $0x8] sm:$0xff]  ;;  %v3570_v24 = vpack.c.bf16 %v396_v21, %v392_v20  ;;  %v382_v9 = vld [vmem:[%s4821_s5 + $0x38] sm:$0xff] }
   0x8   :  { %v3567_v23 = vpack.c.bf16 %v387_v19, %v383_v18  ;;  %v391_v25 = vld [vmem:[%s4821_s5 + $0x80] sm:$0xff]  ;;  %v400_v27 = vld [vmem:[%s4821_s5 + $0xc8] sm:$0xff]  ;;  %v3756_v11 = vld [vmem:[%s4822_s1 + $0x38] sm:$0xff]  ;;  %v3762_v14 = vpack.c.bf16 %v382_v9, %v378_v8 }
   0x9   :  { %2576 = vmatmul.mubr.msk.f32.vlgmr.msra.gmra.mrb[0].mxu1 %vm81_vm0, %v43_v15  ;;  %v395_v26 = vld [vmem:[%s4821_s5 + $0xa0] sm:$0xff]  ;;  %v404_v28 = vld [vmem:[%s4821_s5 + $0xe8] sm:$0xff]  ;;  %v381_v18 = vld [vmem:[%s4821_s5 + $0x30] sm:$0xff] }
   0xa   :  { %2704 = vmatpush1.bf16.msra.mxu1 %v3542_v16  ;;  %289 = vmatprep.mubr.f32.mxu1 %v3441_v3  ;;  %v3593_v30 = vpack.c.bf16 %v395_v26, %v391_v25  ;;  %v399_v31 = vld [vmem:[%s4821_s5 + $0xc0] sm:$0xff]  ;;  %v3602_v33 = vpack.c.bf16 %v404_v28, %v400_v27  ;;  %v52_v34 = vld [vmem:[%s4820_s4 + $0x8] sm:$0xff]  ;;  %v386_v19 = vld [vmem:[%s4821_s5 + $0x58] sm:$0xff] }
   0xb   :  { %2706 = vmatprep.subr.bf16.mxu1 %v3545_v17  ;;  %v403_v32 = vld [vmem:[%s4821_s5 + $0xe0] sm:$0xff]  ;;  %v56_v35 = vld [vmem:[%s4820_s4 + $0x28] sm:$0xff]  ;;  %v390_v20 = vld [vmem:[%s4821_s5 + $0x78] sm:$0xff] }
   0xc   :  { %v51_v36 = vld [vmem:[%s4820_s4] sm:$0xff]  ;;  %v408_v37 = vld [vmem:[%s4821_s5 + $0x108] sm:$0xff]  ;;  %v2693_v39 = vpack.c.bf16 %v56_v35, %v52_v34  ;;  %v3631_v43 = vpack.c.bf16 %v403_v32, %v399_v31  ;;  %v3794_v26 = vpack.c.bf16 %v390_v20, %v386_v19  ;;  %v385_v27 = vld [vmem:[%s4821_s5 + $0x50] sm:$0xff]  ;;  %v61_v20 = vlaneseq }
   0xd   :  { %2577 = vmatmul.mubr.msk.f32.gmra.mrb[2].mxu1 %vm81_vm0, %v3565_v22  ;;  %v412_v38 = vld [vmem:[%s4821_s5 + $0x128] sm:$0xff]  ;;  %v55_v40 = vld [vmem:[%s4820_s4 + $0x20] sm:$0xff]  ;;  %v389_v28 = vld [vmem:[%s4821_s5 + $0x70] sm:$0xff] }
   0xe   :  { %2708 = vmatpush1.bf16.msra.mxu1 %v3567_v23  ;;  %295 = vmatprep.mubr.f32.mxu1 %v3441_v3  ;;  %v2695_v41 = vpack.c.bf16 %v55_v40, %v51_v36  ;;  %v3634_v44 = vpack.c.bf16 %v412_v38, %v408_v37  ;;  %v407_v45 = vld [vmem:[%s4821_s5 + $0x100] sm:$0xff]  ;;  %v416_v47 = vld [vmem:[%s4821_s5 + $0x148] sm:$0xff]  ;;  %v398_v31 = vld [vmem:[%s4821_s5 + $0xb8] sm:$0xff]  ;;  %v3815_v34 = vpack.c.bf16 %v389_v28, %v385_v27  ;;  %v62_v28 = vshrl.u32 %v61_v20, 7 }
   0xf   :  { %2710 = vmatprep.subr.bf16.mxu1 %v3570_v24  ;;  %v411_v46 = vld [vmem:[%s4821_s5 + $0x120] sm:$0xff]  ;;  %2694 = vmatprep.subr.bf16.mxu0 %v2693_v39  ;;  %v420_v48 = vld [vmem:[%s4821_s5 + $0x168] sm:$0xff]  ;;  %v393_v36 = vld [vmem:[%s4821_s5 + $0x90] sm:$0xff] }
  0x10   :  { %2696 = vmatpush1.bf16.msra.mxu0 %v2695_v41  ;;  %v3656_v49 = vld [vmem:[%s4822_s1 + $0x20] sm:$0xff]  ;;  %v3658_v50 = vpack.c.bf16 %v411_v46, %v407_v45  ;;  %v3661_v51 = vpack.c.bf16 %v420_v48, %v416_v47  ;;  %v424_v54 = vld [vmem:[%s4821_s5 + $0x188] sm:$0xff]  ;;  %v397_v37 = vld [vmem:[%s4821_s5 + $0xb0] sm:$0xff] }
  0x11   :  { %2578 = vmatmul.mubr.msk.f32.gmra.mrb[4].mxu1 %vm81_vm0, %v3591_v29  ;;  %2766 = vmatprep.subr.bf16.mxu0 %v3531_v12  ;;  %v415_v52 = vld [vmem:[%s4821_s5 + $0x140] sm:$0xff]  ;;  %v428_v55 = vld [vmem:[%s4821_s5 + $0x1a8] sm:$0xff]  ;;  %v402_v38 = vld [vmem:[%s4821_s5 + $0xd8] sm:$0xff]  ;;  %v3839_v40 = vpack.c.bf16 %v397_v37, %v393_v36 }
  0x12   :  { %2712 = vmatpush1.bf16.msra.mxu1 %v3593_v30  ;;  %301 = vmatprep.mubr.f32.mxu1 %v3441_v3  ;;  %v419_v53 = vld [vmem:[%s4821_s5 + $0x160] sm:$0xff]  ;;  %v3686_v56 = vld [vmem:[%s4822_s1 + $0x28] sm:$0xff]  ;;  %v3691_v58 = vpack.c.bf16 %v428_v55, %v424_v54  ;;  %v406_v39 = vld [vmem:[%s4821_s5 + $0xf8] sm:$0xff] }
  0x13   :  { %2714 = vmatprep.subr.bf16.mxu1 %v3602_v33  ;;  %2568 = vmatmul.mubr.msk.f32.vlgmr.msra.gmra.mrb[0].mxu0 %vm81_vm0, %v43_v15  ;;  %v3688_v57 = vpack.c.bf16 %v419_v53, %v415_v52  ;;  %v423_v59 = vld [vmem:[%s4821_s5 + $0x180] sm:$0xff]  ;;  %v432_v61 = vld [vmem:[%s4821_s5 + $0x1c8] sm:$0xff]  ;;  %v377_v15 = vld [vmem:[%s4821_s5 + $0x10] sm:$0xff]  ;;  %v3843_v41 = vpack.c.bf16 %v406_v39, %v402_v38 }
  0x14   :  { %2768 = vmatpush1.bf16.msra.mxu0 %v3542_v16  ;;  %176 = vmatprep.mubr.f32.mxu0 %v3441_v3  ;;  %v427_v60 = vld [vmem:[%s4821_s5 + $0x1a0] sm:$0xff]  ;;  %v436_v62 = vld [vmem:[%s4821_s5 + $0x1e8] sm:$0xff]  ;;  %v3790_v25 = vpack.c.bf16 %v381_v18, %v377_v15  ;;  %v405_v45 = vld [vmem:[%s4821_s5 + $0xf0] sm:$0xff] }
  0x15   :  { %2579 = vmatmul.mubr.msk.f32.gmra.mrb[6].mxu1 %vm81_vm0, %v3629_v42  ;;  %2770 = vmatprep.subr.bf16.mxu0 %v3545_v17  ;;  %v3714_v63 = vld [vmem:[%s4823_s0] sm:$0xff]  ;;  %v3724_v1 = vpack.c.bf16 %v427_v60, %v423_v59  ;;  %v3729_v2 = vpack.c.bf16 %v436_v62, %v432_v61  ;;  %v410_v46 = vld [vmem:[%s4821_s5 + $0x118] sm:$0xff]  ;;  %v409_v52 = vld [vmem:[%s4821_s5 + $0x110] sm:$0xff] }
  0x16   :  { %2716 = vmatpush1.bf16.msra.mxu1 %v3631_v43  ;;  %307 = vmatprep.mubr.f32.mxu1 %v3441_v3  ;;  %vm2587_vm1 = vcmp.gt.s32.totalorder %v3714_v63, 0  ;;  %vm2591_vm2 = vcmp.gt.s32.totalorder %v3714_v63, 1  ;;  %v431_v4 = vld [vmem:[%s4821_s5 + $0x1c0] sm:$0xff]  ;;  %vm2603_vm3 = vcmp.gt.s32.totalorder %v3714_v63, 4  ;;  %vm2611_vm4 = vcmp.gt.s32.totalorder %v3714_v63, 6  ;;  %v414_v47 = vld [vmem:[%s4821_s5 + $0x138] sm:$0xff] }
  0x17   :  { %2718 = vmatprep.subr.bf16.mxu1 %v3634_v44  ;;  %2569 = vmatmul.mubr.msk.f32.gmra.mrb[2].mxu0 %vm81_vm0, %v3565_v22  ;;  %v435_v5 = vld [vmem:[%s4821_s5 + $0x1e0] sm:$0xff]  ;;  %v611_v6 = vsel %vm2587_vm1, 1, %v3442_v7  ;;  %v864_v10 = vsel %vm2591_vm2, 1, %v3442_v7  ;;  %v1626_v21 = vsel %vm2603_vm3, 1, %v3442_v7  ;;  %v2134_v32 = vsel %vm2611_vm4, 1, %v3442_v7  ;;  %v413_v53 = vld [vmem:[%s4821_s5 + $0x130] sm:$0xff] }
  0x18   :  { %2772 = vmatpush1.bf16.msra.mxu0 %v3567_v23  ;;  %182 = vmatprep.mubr.f32.mxu0 %v3441_v3  ;;  %v3758_v13 = vpack.c.bf16 %v435_v5, %v431_v4  ;;  %v3788_v22 = vld [vmem:[%s4824_s2] sm:$0xff]  ;;  %v418_v54 = vld [vmem:[%s4821_s5 + $0x158] sm:$0xff]  ;;  %v417_v60 = vld [vmem:[%s4821_s5 + $0x150] sm:$0xff]  ;;  %vm2595_vm6 = vcmp.gt.s32.totalorder %v3714_v63, 2  ;;  %vm2599_vm7 = vcmp.gt.s32.totalorder %v3714_v63, 3  ;;  %vm2607_vm8 = vcmp.gt.s32.totalorder %v3714_v63, 5 }
  0x19   :  { %2580 = vmatmul.mubr.msk.f32.gmra.mrb[8].mxu1 %vm81_vm0, %v3656_v49  ;;  %2774 = vmatprep.subr.bf16.mxu0 %v3570_v24  ;;  %v422_v55 = vld [vmem:[%s4821_s5 + $0x178] sm:$0xff]  ;;  %v421_v61 = vld [vmem:[%s4821_s5 + $0x170] sm:$0xff]  ;;  %vm2615_vm9 = vcmp.gt.s32.totalorder %v3714_v63, 7 }
  0x1a   :  { %2720 = vmatpush1.bf16.msra.mxu1 %v3658_v50  ;;  %313 = vmatprep.mubr.f32.mxu1 %v3441_v3  ;;  %v3889_v59 = vpack.c.bf16 %v422_v55, %v418_v54  ;;  %v426_v62 = vld [vmem:[%s4821_s5 + $0x198] sm:$0xff]  ;;  %v3906_v4 = vpack.c.bf16 %v421_v61, %v417_v60  ;;  %v429_v8 = vld [vmem:[%s4821_s5 + $0x1b0] sm:$0xff]  ;;  %v71_v54 = vsub.s32 2, %v62_v28  ;;  %v75_v60 = vsub.s32 3, %v62_v28 }
  0x1b   :  { %2722 = vmatprep.subr.bf16.mxu1 %v3661_v51  ;;  %2570 = vmatmul.mubr.msk.f32.gmra.mrb[4].mxu0 %vm81_vm0, %v3591_v29  ;;  %v394_v29 = vld [vmem:[%s4821_s5 + $0x98] sm:$0xff]  ;;  %v433_v15 = vld [vmem:[%s4821_s5 + $0x1d0] sm:$0xff] }
  0x1c   :  { %613 = vperm.xlu0 %3311, %v611_v6   ;;  %2776 = vmatpush1.bf16.msra.mxu0 %v3593_v30  ;;  %v3819_v35 = vpack.c.bf16 %v398_v31, %v394_v29  ;;  %v425_v6 = vld [vmem:[%s4821_s5 + $0x190] sm:$0xff]  ;;  %v438_v9 = vld [vmem:[%s4821_s5 + $0x1f8] sm:$0xff]  ;;  %v63_v29 = vsub.s32 0, %v62_v28  ;;  %v59_v31 = vld [vmem:[%s4825_s6] sm:$0xf] }
  0x1d   :  { %2581 = vmatmul.mubr.msk.f32.gmra.mrb[10].mxu1 %vm81_vm0, %v3686_v56  ;;  %188 = vmatprep.mubr.f32.mxu0 %v3441_v3  ;;  %v437_v18 = vld [vmem:[%s4821_s5 + $0x1f0] sm:$0xff] }
  0x1e   :  { %2724 = vmatpush1.bf16.msra.mxu1 %v3688_v57  ;;  %319 = vmatprep.mubr.f32.mxu1 %v3441_v3  ;;  %v3936_v19 = vpack.c.bf16 %v437_v18, %v433_v15  ;;  %v3962_v36 = vrot.slane %v59_v31, %v63_v29 }
  0x1f   :  { %2726 = vmatprep.subr.bf16.mxu1 %v3691_v58  ;;  %2778 = vmatprep.subr.bf16.mxu0 %v3602_v33 }
  0x20   :  { %866 = vperm.xlu0 %3311, %v864_v10   ;;  %2571 = vmatmul.mubr.msk.f32.gmra.mrb[6].mxu0 %vm81_vm0, %v3629_v42  ;;  %v401_v42 = vld [vmem:[%s4821_s5 + $0xd0] sm:$0xff]  ;;  %v3924_v10 = vpack.c.bf16 %v429_v8, %v425_v6  ;;  %v3970_v8 = vrot.slane %v59_v31, %v75_v60 }
  0x21   :  { %2582 = vmatmul.mubr.msk.f32.gmra.mrb[12].mxu1 %vm81_vm0, %v3722_v0  ;;  %2780 = vmatpush1.bf16.msra.mxu0 %v3631_v43  ;;  %v3862_v48 = vpack.c.bf16 %v405_v45, %v401_v42 }
  0x22   :  { %2728 = vmatpush1.bf16.msra.mxu1 %v3724_v1  ;;  %325 = vmatprep.mubr.f32.mxu1 %v3441_v3 }
  0x23   :  { %2730 = vmatprep.subr.bf16.mxu1 %v3729_v2  ;;  %194 = vmatprep.mubr.f32.mxu0 %v3441_v3 }
  0x24   :  { %1628 = vperm.xlu0 %3311, %v1626_v21   ;;  %2782 = vmatprep.subr.bf16.mxu0 %v3634_v44 }
  0x25   :  { %2583 = vmatmul.mubr.msk.f32.gmra.mrb[14].mxu1 %vm81_vm0, %v3756_v11  ;;  %2572 = vmatmul.mubr.msk.f32.gmra.mrb[8].mxu0 %vm81_vm0, %v3656_v49  ;;  %v3866_v49 = vpack.c.bf16 %v414_v47, %v410_v46 }
  0x26   :  { %2732 = vmatpush1.bf16.msra.mxu1 %v3758_v13  ;;  %503 = vmatprep.mubr.f32.mxu1 %v3441_v3 }
  0x27   :  { %2734 = vmatprep.subr.bf16.mxu1 %v3762_v14  ;;  %2784 = vmatpush1.bf16.msra.mxu0 %v3658_v50 }
  0x28   :  { %2136 = vperm.xlu0 %3311, %v2134_v32   ;;  %200 = vmatprep.mubr.f32.mxu0 %v3441_v3  ;;  %v67_v32 = vsub.s32 1, %v62_v28 }
  0x29   :  { %504 = vmatmul.mubr.f32.vlgmr.msra.gmra.mrb[16].mxu1 %v3788_v22  ;;  %2786 = vmatprep.subr.bf16.mxu0 %v3661_v51 }
  0x2a   :  { %2736 = vmatpush1.bf16.msra.mxu1 %v3790_v25  ;;  %574 = vmatprep.mubr.f32.mxu1 %v3441_v3  ;;  %v3964_v37 = vrot.slane %v59_v31, %v67_v32 }
  0x2b   :  { %2738 = vmatprep.subr.bf16.mxu1 %v3794_v26  ;;  %2573 = vmatmul.mubr.msk.f32.gmra.mrb[10].mxu0 %vm81_vm0, %v3686_v56  ;;  %v3885_v56 = vpack.c.bf16 %v413_v53, %v409_v52 }
  0x2c   :  { %206 = vmatprep.mubr.f32.mxu0 %v3441_v3  ;;  %2788 = vmatpush1.bf16.msra.mxu0 %v3688_v57 }
  0x2d   :  { %2790 = vmatprep.subr.bf16.mxu0 %v3691_v58 }
  0x2e   :  { %2740 = vmatpush1.bf16.msra.mxu1 %v3815_v34 }
  0x2f   :  { %2742 = vmatprep.subr.bf16.mxu1 %v3819_v35  ;;  %2574 = vmatmul.mubr.msk.f32.gmra.mrb[12].mxu0 %vm81_vm0, %v3722_v0  ;;  %v430_v0 = vld [vmem:[%s4821_s5 + $0x1b8] sm:$0xff] }
  0x30   :  { %212 = vmatprep.mubr.f32.mxu0 %v3441_v3  ;;  %2792 = vmatpush1.bf16.msra.mxu0 %v3724_v1  ;;  %v3909_v5 = vpack.c.bf16 %v430_v0, %v426_v62  ;;  %v3968_v0 = vrot.slane %v59_v31, %v71_v54 }
  0x31   :  { %2794 = vmatprep.subr.bf16.mxu0 %v3729_v2 }
  0x32   :  { %2744 = vmatpush1.bf16.msra.mxu1 %v3839_v40 }
  0x33   :  { %2746 = vmatprep.subr.bf16.mxu1 %v3843_v41  ;;  %2575 = vmatmul.mubr.msk.f32.gmra.mrb[14].mxu0 %vm81_vm0, %v3756_v11 }
  0x34   :  { %755 = vmatprep.mubr.f32.mxu0 %v3441_v3  ;;  %2796 = vmatpush1.bf16.msra.mxu0 %v3758_v13 }
  0x35   :  { %2830 = vmatprep.subr.bf16.mxu0 %v3531_v12  ;;  %v434_v12 = vld [vmem:[%s4821_s5 + $0x1d8] sm:$0xff] }
  0x36   :  { %2748 = vmatpush1.bf16.msra.mxu1 %v3862_v48  ;;  %v3927_v11 = vpack.c.bf16 %v438_v9, %v434_v12 }
  0x37   :  { %2750 = vmatprep.subr.bf16.mxu1 %v3866_v49 }
  0x3a   :  { %2752 = vmatpush1.bf16.msra.mxu1 %v3885_v56 }
  0x3b   :  { %2754 = vmatprep.subr.bf16.mxu1 %v3889_v59 }
  0x3e   :  { %2756 = vmatpush1.bf16.msra.mxu1 %v3906_v4 }
  0x3f   :  { %2758 = vmatprep.subr.bf16.mxu1 %v3909_v5 }
  0x42   :  { %2760 = vmatpush1.bf16.msra.mxu1 %v3924_v10 }
  0x43   :  { %2762 = vmatprep.subr.bf16.mxu1 %v3927_v11 }
  0x46   :  { %2764 = vmatpush1.bf16.msra.mxu1 %v3936_v19 }
  0x47   :  { %2798 = vmatprep.subr.bf16.mxu1 %v3762_v14 }
  0x49   :  { %575 = vmatmul.mubr.f32.vlgmr.msra.gmra.mrb[0].mxu1 %v3788_v22 }
  0x4a   :  { %2800 = vmatpush1.bf16.msra.mxu1 %v3790_v25  ;;  %826 = vmatprep.mubr.f32.mxu1 %v3441_v3 }
  0x4b   :  { %2802 = vmatprep.subr.bf16.mxu1 %v3794_v26 }
  0x4e   :  { %2804 = vmatpush1.bf16.msra.mxu1 %v3815_v34 }
  0x4f   :  { %2806 = vmatprep.subr.bf16.mxu1 %v3819_v35 }
  0x52   :  { %2808 = vmatpush1.bf16.msra.mxu1 %v3839_v40 }
  0x53   :  { %2810 = vmatprep.subr.bf16.mxu1 %v3843_v41 }
  0x56   :  { %2812 = vmatpush1.bf16.msra.mxu1 %v3862_v48 }
  0x57   :  { %2814 = vmatprep.subr.bf16.mxu1 %v3866_v49 }
  0x5a   :  { %2816 = vmatpush1.bf16.msra.mxu1 %v3885_v56 }
  0x5b   :  { %2818 = vmatprep.subr.bf16.mxu1 %v3889_v59 }
  0x5e   :  { %2820 = vmatpush1.bf16.msra.mxu1 %v3906_v4 }
  0x5f   :  { %2822 = vmatprep.subr.bf16.mxu1 %v3909_v5 }
  0x62   :  { %2824 = vmatpush1.bf16.msra.mxu1 %v3924_v10 }
  0x63   :  { %2826 = vmatprep.subr.bf16.mxu1 %v3927_v11 }
  0x66   :  { %2828 = vmatpush1.bf16.msra.mxu1 %v3936_v19 }
  0x67   :  { %2862 = vmatprep.subr.bf16.mxu1 %v3762_v14 }
  0x9b   :  { %v3977_v29 = vpop.permute.xlu0 %613 }
  0x9c   :  { %vm615_vm5 = vcmp.eq.s32.totalorder %v3977_v29, 1  ;;  %v2417_v29 = vld [vmem:[%s4827_s7 + $0x48] sm:$0xff] }
  0xe6   :  { %v172_v21 = vpop.f32.mrb[0].mxu0 }
  0xe7   :  { %v174_v27 = vpop.f32.mrb[1].mxu0  ;;  %v173_v38 = vadd.f32 %v172_v21, %v3962_v36 }
  0xe8   :  { %v175_v39 = vadd.f32 %v174_v27, %v3964_v37  ;;  %v41_v27 = vld [vmem:[%s4826_s3] sm:$0xff] }
  0xfc   :  { %v505_v42 = vpop.f32.mrb[16].mxu1 }
  0xfd   :  { %v581_v45 = vadd.f32 %v505_v42, %v173_v38  ;;  %v507_v46 = vpop.f32.mrb[17].mxu1 }
  0xfe   :  { %v582_v47 = vadd.f32 %v507_v46, %v175_v39 }
  0xff   :  { %v2584_v53 = vmul.f32 -1.442695, %v581_v45 }
 0x100   :  { %v2585_v52 = vmul.f32 -1.442695, %v582_v47 }
 0x102   :  { %3313 = vpow2.f32 %v2585_v52 }
 0x103   :  { %3315 = vpow2.f32 %v2584_v53 }
 0x10c   :  { %v3314_v55 = vpop.eup %3313 }
 0x10d   :  { %v3316_v61 = vpop.eup %3315  ;;  %v594_v62 = vadd.f32 1.0, %v3314_v55 }
 0x10e   :  { %v588_v6 = vadd.f32 1.0, %v3316_v61 }
 0x10f   :  { %3317 = vrcp.f32 %v594_v62 }
 0x110   :  { %3319 = vrcp.f32 %v588_v6 }
 0x119   :  { %v3318_v21 = vpop.eup %3317 }
 0x11a   :  { %v3320_v28 = vpop.eup %3319  ;;  %v604_v32 = vmul.f32 %v3318_v21, %v41_v27 }
 0x11c   :  { %v576_v12 = vpop.f32.mrb[0].mxu1 }
 0x11d   :  { %v3263_v9 = vadd.f32 %v576_v12, %v3968_v0  ;;  %v578_v15 = vpop.f32.mrb[1].mxu1 }
 0x11e   :  { %v3264_v18 = vadd.f32 %v578_v15, %v3970_v8 }
 0x11f   :  { %3321 = vtanh.f32 %v3263_v9 }
 0x120   :  { %v2586_v20 = vmul.f32 -1.442695, %v3264_v18  ;;  %v1143_v18 = vld [vmem:[%s4821_s5 + $0x40] sm:$0xff] }
 0x122   :  { %3323 = vpow2.f32 %v2586_v20  ;;  %v1147_v20 = vld [vmem:[%s4821_s5 + $0x60] sm:$0xff] }
 0x123   :  { %v4099_v21 = vpack.c.bf16 %v1147_v20, %v1143_v18  ;;  %v1192_v20 = vld [vmem:[%s4821_s5 + $0x1c8] sm:$0xff] }
 0x129   :  { %v3322_v31 = vpop.eup %3321 }
 0x12a   :  { %v605_v38 = vmul.f32 %v3322_v31, %v3320_v28  ;;  %v1156_v28 = vld [vmem:[%s4821_s5 + $0xa8] sm:$0xff]  ;;  %v1151_v31 = vld [vmem:[%s4821_s5 + $0x80] sm:$0xff] }
 0x12c   :  { %v3324_v39 = vpop.eup %3323  ;;  %v606_v42 = vadd.f32 %v605_v38, %v604_v32  ;;  %v1155_v38 = vld [vmem:[%s4821_s5 + $0xa0] sm:$0xff] }
 0x12d   :  { %v601_v45 = vadd.f32 1.0, %v3324_v39  ;;  %v1160_v39 = vld [vmem:[%s4821_s5 + $0xc8] sm:$0xff] }
 0x12e   :  { %3325 = vtanh.f32 %v606_v42  ;;  %v3982_v46 = vsel %vm615_vm5, %v606_v42, %v41_v27  ;;  %v1152_v27 = vld [vmem:[%s4821_s5 + $0x88] sm:$0xff] }
 0x12f   :  { %3327 = vrcp.f32 %v601_v45  ;;  %v4111_v32 = vpack.c.bf16 %v1156_v28, %v1152_v27  ;;  %v1164_v42 = vld [vmem:[%s4821_s5 + $0xe8] sm:$0xff]  ;;  %v4123_v45 = vpack.c.bf16 %v1155_v38, %v1151_v31  ;;  %v1194_v28 = vld [vmem:[%s4821_s5 + $0x1d8] sm:$0xff] }
 0x130   :  { %v1196_v27 = vld [vmem:[%s4821_s5 + $0x1e8] sm:$0xff]  ;;  %v1198_v38 = vld [vmem:[%s4821_s5 + $0x1f8] sm:$0xff] }
 0x131   :  { %v4256_v31 = vpack.c.bf16 %v1196_v27, %v1192_v20 }
 0x138   :  { %v3326_v47 = vpop.eup %3325 }
 0x139   :  { %v3328_v52 = vpop.eup %3327 }
 0x13a   :  { %v3984_v53 = vmul.f32 %v3328_v52, %v3326_v47  ;;  %v1159_v47 = vld [vmem:[%s4821_s5 + $0xc0] sm:$0xff] }
 0x13b   :  { %v1163_v52 = vld [vmem:[%s4821_s5 + $0xe0] sm:$0xff] }
 0x13c   :  { %v3990_v54 = vsel %vm615_vm5, %v3984_v53, %v3788_v22 }
 0x13d   :  { %756 = vmatmul.mubr.f32.vlgmr.msra.gmra.mrb[2].mxu0 %v3990_v54  ;;  %827 = vmatmul.mubr.f32.vlgmr.msra.gmra.mrb[2].mxu1 %v3990_v54 }
 0x13e   :  { %2832 = vmatpush1.bf16.msra.mxu0 %v3542_v16  ;;  %2864 = vmatpush1.bf16.msra.mxu1 %v3790_v25  ;;  %v1118_v16 = vsel %vm2595_vm6, 1, %v3442_v7 }
 0x13f   :  { %2834 = vmatprep.subr.bf16.mxu0 %v3545_v17  ;;  %2866 = vmatprep.subr.bf16.mxu1 %v3794_v26  ;;  %v1372_v17 = vsel %vm2599_vm7, 1, %v3442_v7 }
 0x140   :  { %1009 = vmatprep.mubr.f32.mxu0 %v3441_v3  ;;  %1080 = vmatprep.mubr.f32.mxu1 %v3441_v3 }
 0x141   :  { %1120 = vperm.xlu1 %3312, %v1118_v16   ;;  %v1168_v16 = vld [vmem:[%s4821_s5 + $0x108] sm:$0xff] }
 0x142   :  { %2836 = vmatpush1.bf16.msra.mxu0 %v3567_v23  ;;  %2868 = vmatpush1.bf16.msra.mxu1 %v3815_v34  ;;  %v1880_v23 = vsel %vm2607_vm8, 1, %v3442_v7 }
 0x143   :  { %2838 = vmatprep.subr.bf16.mxu0 %v3570_v24  ;;  %2870 = vmatprep.subr.bf16.mxu1 %v3819_v35  ;;  %v2388_v24 = vsel %vm2615_vm9, 1, %v3442_v7 }
 0x145   :  { %1374 = vperm.xlu1 %3312, %v1372_v17   ;;  %v1172_v17 = vld [vmem:[%s4821_s5 + $0x128] sm:$0xff] }
 0x146   :  { %2840 = vmatpush1.bf16.msra.mxu0 %v3593_v30  ;;  %2872 = vmatpush1.bf16.msra.mxu1 %v3839_v40 }
 0x147   :  { %2842 = vmatprep.subr.bf16.mxu0 %v3602_v33  ;;  %2874 = vmatprep.subr.bf16.mxu1 %v3843_v41 }
 0x149   :  { %1882 = vperm.xlu1 %3312, %v1880_v23   ;;  %v1170_v23 = vld [vmem:[%s4821_s5 + $0x118] sm:$0xff] }
 0x14a   :  { %2844 = vmatpush1.bf16.msra.mxu0 %v3631_v43  ;;  %2876 = vmatpush1.bf16.msra.mxu1 %v3862_v48 }
 0x14b   :  { %2846 = vmatprep.subr.bf16.mxu0 %v3634_v44  ;;  %2878 = vmatprep.subr.bf16.mxu1 %v3866_v49 }
 0x14d   :  { %2390 = vperm.xlu1 %3312, %v2388_v24   ;;  %v4148_v24 = vpack.c.bf16 %v1172_v17, %v1168_v16  ;;  %v1193_v16 = vld [vmem:[%s4821_s5 + $0x1d0] sm:$0xff] }
 0x14e   :  { %2848 = vmatpush1.bf16.msra.mxu0 %v3658_v50  ;;  %2880 = vmatpush1.bf16.msra.mxu1 %v3885_v56  ;;  %v1197_v17 = vld [vmem:[%s4821_s5 + $0x1f0] sm:$0xff] }
 0x14f   :  { %2850 = vmatprep.subr.bf16.mxu0 %v3661_v51  ;;  %2882 = vmatprep.subr.bf16.mxu1 %v3889_v59 }
 0x152   :  { %2852 = vmatpush1.bf16.msra.mxu0 %v3688_v57  ;;  %2884 = vmatpush1.bf16.msra.mxu1 %v3906_v4 }
 0x153   :  { %2854 = vmatprep.subr.bf16.mxu0 %v3691_v58  ;;  %2886 = vmatprep.subr.bf16.mxu1 %v3909_v5 }
 0x156   :  { %2856 = vmatpush1.bf16.msra.mxu0 %v3724_v1  ;;  %2888 = vmatpush1.bf16.msra.mxu1 %v3924_v10 }
 0x157   :  { %2858 = vmatprep.subr.bf16.mxu0 %v3729_v2  ;;  %2890 = vmatprep.subr.bf16.mxu1 %v3927_v11 }
 0x15a   :  { %2860 = vmatpush1.bf16.msra.mxu0 %v3758_v13  ;;  %2892 = vmatpush1.bf16.msra.mxu1 %v3936_v19  ;;  %v4040_v19 = vpop.permute.xlu0 %866 }
 0x15b   :  { %2926 = vmatprep.subr.bf16.mxu1 %v3762_v14  ;;  %vm868_vm10 = vcmp.eq.s32.totalorder %v4040_v19, 1 }
 0x210   :  { %v757_v30 = vpop.f32.mrb[2].mxu0  ;;  %v828_v33 = vpop.f32.mrb[2].mxu1 }
 0x211   :  { %v3249_v43 = vadd.f32 %v757_v30, %v3962_v36  ;;  %v759_v44 = vpop.f32.mrb[3].mxu0  ;;  %v830_v50 = vpop.f32.mrb[3].mxu1  ;;  %v3265_v63 = vadd.f32 %v828_v33, %v3968_v0  ;;  %v1174_v30 = vld [vmem:[%s4821_s5 + $0x138] sm:$0xff]  ;;  %v1167_v33 = vld [vmem:[%s4821_s5 + $0x100] sm:$0xff] }
 0x212   :  { %v3250_v51 = vadd.f32 %v759_v44, %v3964_v37  ;;  %v3266_v1 = vadd.f32 %v830_v50, %v3970_v8  ;;  %v4159_v44 = vpack.c.bf16 %v1174_v30, %v1170_v23  ;;  %v4278_v23 = vpack.c.bf16 %v1197_v17, %v1193_v16 }
 0x213   :  { %v2588_v57 = vmul.f32 -1.442695, %v3249_v43  ;;  %v1171_v43 = vld [vmem:[%s4821_s5 + $0x120] sm:$0xff] }
 0x214   :  { %v2589_v58 = vmul.f32 -1.442695, %v3250_v51  ;;  %v2590_v2 = vmul.f32 -1.442695, %v3266_v1  ;;  %v4161_v50 = vpack.c.bf16 %v1171_v43, %v1167_v33  ;;  %v1169_v51 = vld [vmem:[%s4821_s5 + $0x110] sm:$0xff]  ;;  %v1176_v1 = vld [vmem:[%s4821_s5 + $0x148] sm:$0xff] }
 0x215   :  { %3329 = vpow2.f32 %v2588_v57  ;;  %v1173_v57 = vld [vmem:[%s4821_s5 + $0x130] sm:$0xff] }
 0x216   :  { %3331 = vpow2.f32 %v2589_v58  ;;  %v4170_v58 = vpack.c.bf16 %v1173_v57, %v1169_v51 }
 0x217   :  { %3333 = vpow2.f32 %v2590_v2  ;;  %v1180_v2 = vld [vmem:[%s4821_s5 + $0x168] sm:$0xff] }
 0x218   :  { %3335 = vtanh.f32 %v3265_v63  ;;  %v1178_v63 = vld [vmem:[%s4821_s5 + $0x158] sm:$0xff] }
 0x21f   :  { %v3330_v13 = vpop.eup %3329 }
 0x220   :  { %v3332_v7 = vpop.eup %3331  ;;  %v840_v14 = vadd.f32 1.0, %v3330_v13  ;;  %v4184_v13 = vpack.c.bf16 %v1180_v2, %v1176_v1 }
 0x221   :  { %v846_v22 = vadd.f32 1.0, %v3332_v7  ;;  %v3334_v49 = vpop.eup %3333  ;;  %v1182_v7 = vld [vmem:[%s4821_s5 + $0x178] sm:$0xff] }
 0x222   :  { %3337 = vrcp.f32 %v840_v14  ;;  %v3336_v56 = vpop.eup %3335  ;;  %v853_v10 = vadd.f32 1.0, %v3334_v49  ;;  %v1175_v14 = vld [vmem:[%s4821_s5 + $0x140] sm:$0xff]  ;;  %v4195_v49 = vpack.c.bf16 %v1182_v7, %v1178_v63 }
 0x223   :  { %3339 = vrcp.f32 %v846_v22  ;;  %v1179_v22 = vld [vmem:[%s4821_s5 + $0x160] sm:$0xff] }
 0x224   :  { %3341 = vrcp.f32 %v853_v10  ;;  %v1184_v10 = vld [vmem:[%s4821_s5 + $0x188] sm:$0xff] }
 0x22c   :  { %v3338_v59 = vpop.eup %3337 }
 0x22d   :  { %v3340_v4 = vpop.eup %3339  ;;  %v857_v5 = vmul.f32 %v3338_v59, %v3336_v56  ;;  %v4197_v56 = vpack.c.bf16 %v1179_v22, %v1175_v14  ;;  %v1177_v59 = vld [vmem:[%s4821_s5 + $0x150] sm:$0xff] }
 0x22e   :  { %v856_v11 = vmul.f32 %v3340_v4, %v3982_v46  ;;  %v3342_v61 = vpop.eup %3341  ;;  %v1181_v4 = vld [vmem:[%s4821_s5 + $0x170] sm:$0xff] }
 0x230   :  { %v858_v55 = vadd.f32 %v857_v5, %v856_v11  ;;  %v4206_v5 = vpack.c.bf16 %v1181_v4, %v1177_v59  ;;  %v1188_v11 = vld [vmem:[%s4821_s5 + $0x1a8] sm:$0xff] }
 0x232   :  { %3343 = vtanh.f32 %v858_v55  ;;  %v4046_v60 = vsel %vm868_vm10, %v858_v55, %v3982_v46  ;;  %v4126_v46 = vpack.c.bf16 %v1164_v42, %v1160_v39  ;;  %v1186_v55 = vld [vmem:[%s4821_s5 + $0x198] sm:$0xff]  ;;  %v1191_v39 = vld [vmem:[%s4821_s5 + $0x1c0] sm:$0xff] }
 0x233   :  { %v1195_v42 = vld [vmem:[%s4821_s5 + $0x1e0] sm:$0xff] }
 0x23c   :  { %v3344_v62 = vpop.eup %3343 }
 0x23d   :  { %v4048_v6 = vmul.f32 %v3344_v62, %v3342_v61  ;;  %v4220_v61 = vpack.c.bf16 %v1188_v11, %v1184_v10  ;;  %v1190_v62 = vld [vmem:[%s4821_s5 + $0x1b8] sm:$0xff] }
 0x23f   :  { %v4054_v12 = vsel %vm868_vm10, %v4048_v6, %v3990_v54  ;;  %v4135_v54 = vpack.c.bf16 %v1163_v52, %v1159_v47  ;;  %v4267_v47 = vpack.c.bf16 %v1198_v38, %v1194_v28  ;;  %v4269_v52 = vpack.c.bf16 %v1195_v42, %v1191_v39 }
 0x240   :  { %1010 = vmatmul.mubr.f32.vlgmr.msra.gmra.mrb[4].mxu0 %v4054_v12  ;;  %1081 = vmatmul.mubr.f32.vlgmr.msra.gmra.mrb[4].mxu1 %v4054_v12 }
 0x241   :  { %2928 = vmatpush1.bf16.msra.mxu1 %v3790_v25  ;;  %1263 = vmatprep.mubr.f32.mxu0 %v3441_v3  ;;  %v1136_v25 = vld [vmem:[%s4821_s5 + $0x8] sm:$0xff] }
 0x242   :  { %2930 = vmatprep.subr.bf16.mxu1 %v3794_v26  ;;  %1334 = vmatprep.mubr.f32.mxu1 %v3441_v3  ;;  %v1140_v26 = vld [vmem:[%s4821_s5 + $0x28] sm:$0xff] }
 0x243   :  { %v4073_v9 = vpack.c.bf16 %v1140_v26, %v1136_v25  ;;  %v1183_v25 = vld [vmem:[%s4821_s5 + $0x180] sm:$0xff] }
 0x244   :  { %v1187_v26 = vld [vmem:[%s4821_s5 + $0x1a0] sm:$0xff] }
 0x245   :  { %2932 = vmatpush1.bf16.msra.mxu1 %v3815_v34  ;;  %v1135_v34 = vld [vmem:[%s4821_s5] sm:$0xff]  ;;  %2894 = vmatprep.subr.bf16.mxu0 %v4073_v9 }
 0x246   :  { %2934 = vmatprep.subr.bf16.mxu1 %v3819_v35  ;;  %v1139_v35 = vld [vmem:[%s4821_s5 + $0x20] sm:$0xff] }
 0x249   :  { %2936 = vmatpush1.bf16.msra.mxu1 %v3839_v40  ;;  %v4081_v40 = vpack.c.bf16 %v1139_v35, %v1135_v34  ;;  %v4231_v34 = vpack.c.bf16 %v1190_v62, %v1186_v55  ;;  %v4233_v35 = vpack.c.bf16 %v1187_v26, %v1183_v25  ;;  %v4288_v26 = vpop.permute.xlu1 %1120 }
 0x24a   :  { %2938 = vmatprep.subr.bf16.mxu1 %v3843_v41  ;;  %v1144_v41 = vld [vmem:[%s4821_s5 + $0x48] sm:$0xff]  ;;  %vm1122_vm11 = vcmp.eq.s32.totalorder %v4288_v26, 1 }
 0x24b   :  { %2896 = vmatpush1.bf16.msra.mxu0 %v4081_v40 }
 0x24d   :  { %2940 = vmatpush1.bf16.msra.mxu1 %v3862_v48  ;;  %v1148_v48 = vld [vmem:[%s4821_s5 + $0x68] sm:$0xff] }
 0x24e   :  { %v4091_v15 = vpack.c.bf16 %v1148_v48, %v1144_v41  ;;  %2942 = vmatprep.subr.bf16.mxu1 %v4159_v44  ;;  %v1185_v41 = vld [vmem:[%s4821_s5 + $0x190] sm:$0xff] }
 0x24f   :  { %v1189_v48 = vld [vmem:[%s4821_s5 + $0x1b0] sm:$0xff] }
 0x250   :  { %2898 = vmatprep.subr.bf16.mxu0 %v4091_v15  ;;  %v4242_v18 = vpack.c.bf16 %v1189_v48, %v1185_v41 }
 0x251   :  { %2900 = vmatpush1.bf16.msra.mxu0 %v4099_v21  ;;  %2944 = vmatpush1.bf16.msra.mxu1 %v4170_v58 }
 0x252   :  { %2902 = vmatprep.subr.bf16.mxu0 %v4111_v32  ;;  %2946 = vmatprep.subr.bf16.mxu1 %v4195_v49 }
 0x255   :  { %2904 = vmatpush1.bf16.msra.mxu0 %v4123_v45  ;;  %2948 = vmatpush1.bf16.msra.mxu1 %v4206_v5 }
 0x256   :  { %2906 = vmatprep.subr.bf16.mxu0 %v4126_v46  ;;  %2950 = vmatprep.subr.bf16.mxu1 %v4231_v34 }
 0x259   :  { %2908 = vmatpush1.bf16.msra.mxu0 %v4135_v54  ;;  %2952 = vmatpush1.bf16.msra.mxu1 %v4242_v18 }
 0x25a   :  { %2910 = vmatprep.subr.bf16.mxu0 %v4148_v24  ;;  %2954 = vmatprep.subr.bf16.mxu1 %v4267_v47 }
 0x25d   :  { %2912 = vmatpush1.bf16.msra.mxu0 %v4161_v50  ;;  %2956 = vmatpush1.bf16.msra.mxu1 %v4278_v23 }
 0x25e   :  { %2914 = vmatprep.subr.bf16.mxu0 %v4184_v13 }
 0x261   :  { %2916 = vmatpush1.bf16.msra.mxu0 %v4197_v56 }
 0x262   :  { %2918 = vmatprep.subr.bf16.mxu0 %v4220_v61 }
 0x265   :  { %2920 = vmatpush1.bf16.msra.mxu0 %v4233_v35 }
 0x266   :  { %2922 = vmatprep.subr.bf16.mxu0 %v4256_v31 }
 0x269   :  { %2924 = vmatpush1.bf16.msra.mxu0 %v4269_v52 }
 0x26a   :  { %2958 = vmatprep.subr.bf16.mxu0 %v4073_v9 }
 0x313   :  { %v1011_v30 = vpop.f32.mrb[4].mxu0  ;;  %v1082_v33 = vpop.f32.mrb[4].mxu1 }
 0x314   :  { %v3251_v43 = vadd.f32 %v1011_v30, %v3962_v36  ;;  %v1013_v51 = vpop.f32.mrb[5].mxu0  ;;  %v1084_v57 = vpop.f32.mrb[5].mxu1  ;;  %v3267_v22 = vadd.f32 %v1082_v33, %v3968_v0  ;;  %v1391_v33 = vld [vmem:[%s4821_s5 + $0x10] sm:$0xff] }
 0x315   :  { %v3252_v1 = vadd.f32 %v1013_v51, %v3964_v37  ;;  %v3268_v7 = vadd.f32 %v1084_v57, %v3970_v8  ;;  %v1400_v57 = vld [vmem:[%s4821_s5 + $0x58] sm:$0xff] }
 0x316   :  { %v2592_v2 = vmul.f32 -1.442695, %v3251_v43  ;;  %v1395_v43 = vld [vmem:[%s4821_s5 + $0x30] sm:$0xff] }
 0x317   :  { %v2593_v63 = vmul.f32 -1.442695, %v3252_v1  ;;  %v2594_v14 = vmul.f32 -1.442695, %v3268_v7  ;;  %v4339_v51 = vpack.c.bf16 %v1395_v43, %v1391_v33  ;;  %v1404_v1 = vld [vmem:[%s4821_s5 + $0x78] sm:$0xff]  ;;  %v1403_v7 = vld [vmem:[%s4821_s5 + $0x70] sm:$0xff] }
 0x318   :  { %3345 = vpow2.f32 %v2592_v2  ;;  %v4349_v2 = vpack.c.bf16 %v1404_v1, %v1400_v57 }
 0x319   :  { %3347 = vpow2.f32 %v2593_v63  ;;  %v1399_v63 = vld [vmem:[%s4821_s5 + $0x50] sm:$0xff] }
 0x31a   :  { %3349 = vpow2.f32 %v2594_v14  ;;  %v4357_v14 = vpack.c.bf16 %v1403_v7, %v1399_v63 }
 0x31b   :  { %3351 = vtanh.f32 %v3267_v22  ;;  %v1408_v22 = vld [vmem:[%s4821_s5 + $0x98] sm:$0xff] }
 0x322   :  { %v3346_v59 = vpop.eup %3345 }
 0x323   :  { %v3348_v4 = vpop.eup %3347  ;;  %v1094_v10 = vadd.f32 1.0, %v3346_v59  ;;  %v1412_v59 = vld [vmem:[%s4821_s5 + $0xb8] sm:$0xff] }
 0x324   :  { %v1100_v11 = vadd.f32 1.0, %v3348_v4  ;;  %v3350_v55 = vpop.eup %3349  ;;  %v4367_v4 = vpack.c.bf16 %v1412_v59, %v1408_v22 }
 0x325   :  { %3353 = vrcp.f32 %v1094_v10  ;;  %v3352_v62 = vpop.eup %3351  ;;  %v1107_v48 = vadd.f32 1.0, %v3350_v55  ;;  %v1407_v10 = vld [vmem:[%s4821_s5 + $0x90] sm:$0xff] }
 0x326   :  { %3355 = vrcp.f32 %v1100_v11  ;;  %v1411_v11 = vld [vmem:[%s4821_s5 + $0xb0] sm:$0xff] }
 0x327   :  { %3357 = vrcp.f32 %v1107_v48  ;;  %v4375_v55 = vpack.c.bf16 %v1411_v11, %v1407_v10  ;;  %v1415_v48 = vld [vmem:[%s4821_s5 + $0xd0] sm:$0xff] }
 0x32f   :  { %v3354_v25 = vpop.eup %3353 }
 0x330   :  { %v3356_v41 = vpop.eup %3355  ;;  %v1111_v20 = vmul.f32 %v3354_v25, %v3352_v62  ;;  %v1416_v62 = vld [vmem:[%s4821_s5 + $0xd8] sm:$0xff] }
 0x331   :  { %v1110_v27 = vmul.f32 %v3356_v41, %v4046_v60  ;;  %v3358_v39 = vpop.eup %3357  ;;  %v1420_v25 = vld [vmem:[%s4821_s5 + $0xf8] sm:$0xff] }
 0x332   :  { %v4385_v41 = vpack.c.bf16 %v1420_v25, %v1416_v62 }
 0x333   :  { %v1112_v28 = vadd.f32 %v1111_v20, %v1110_v27  ;;  %v1419_v20 = vld [vmem:[%s4821_s5 + $0xf0] sm:$0xff] }
 0x334   :  { %v4393_v27 = vpack.c.bf16 %v1419_v20, %v1415_v48 }
 0x335   :  { %3359 = vtanh.f32 %v1112_v28  ;;  %v4295_v38 = vsel %vm1122_vm11, %v1112_v28, %v4046_v60  ;;  %v1392_v60 = vld [vmem:[%s4821_s5 + $0x18] sm:$0xff] }
 0x33f   :  { %v3360_v42 = vpop.eup %3359 }
 0x340   :  { %v4297_v16 = vmul.f32 %v3360_v42, %v3358_v39 }
 0x342   :  { %v4303_v17 = vsel %vm1122_vm11, %v4297_v16, %v4054_v12  ;;  %v1396_v12 = vld [vmem:[%s4821_s5 + $0x38] sm:$0xff] }
 0x343   :  { %1264 = vmatmul.mubr.f32.vlgmr.msra.gmra.mrb[6].mxu0 %v4303_v17  ;;  %1335 = vmatmul.mubr.f32.vlgmr.msra.gmra.mrb[6].mxu1 %v4303_v17  ;;  %v4331_v30 = vpack.c.bf16 %v1396_v12, %v1392_v60 }
 0x344   :  { %2960 = vmatpush1.bf16.msra.mxu0 %v4081_v40  ;;  %1517 = vmatprep.mubr.f32.mxu0 %v3441_v3 }
 0x345   :  { %2962 = vmatprep.subr.bf16.mxu0 %v4091_v15  ;;  %1588 = vmatprep.mubr.f32.mxu1 %v3441_v3 }
 0x346   :  { %2990 = vmatprep.subr.bf16.mxu1 %v4331_v30 }
 0x347   :  { %2992 = vmatpush1.bf16.msra.mxu1 %v4339_v51 }
 0x348   :  { %2964 = vmatpush1.bf16.msra.mxu0 %v4099_v21  ;;  %2994 = vmatprep.subr.bf16.mxu1 %v4349_v2 }
 0x349   :  { %2966 = vmatprep.subr.bf16.mxu0 %v4111_v32 }
 0x34b   :  { %2996 = vmatpush1.bf16.msra.mxu1 %v4357_v14 }
 0x34c   :  { %2968 = vmatpush1.bf16.msra.mxu0 %v4123_v45  ;;  %2998 = vmatprep.subr.bf16.mxu1 %v4367_v4 }
 0x34d   :  { %2970 = vmatprep.subr.bf16.mxu0 %v4126_v46 }
 0x34f   :  { %3000 = vmatpush1.bf16.msra.mxu1 %v4375_v55 }
 0x350   :  { %2972 = vmatpush1.bf16.msra.mxu0 %v4135_v54  ;;  %3002 = vmatprep.subr.bf16.mxu1 %v4385_v41 }
 0x351   :  { %2974 = vmatprep.subr.bf16.mxu0 %v4148_v24 }
 0x353   :  { %3004 = vmatpush1.bf16.msra.mxu1 %v4393_v27 }
 0x354   :  { %2976 = vmatpush1.bf16.msra.mxu0 %v4161_v50  ;;  %3006 = vmatprep.subr.bf16.mxu1 %v4159_v44 }
 0x355   :  { %2978 = vmatprep.subr.bf16.mxu0 %v4184_v13 }
 0x357   :  { %3008 = vmatpush1.bf16.msra.mxu1 %v4170_v58 }
 0x358   :  { %2980 = vmatpush1.bf16.msra.mxu0 %v4197_v56  ;;  %3010 = vmatprep.subr.bf16.mxu1 %v4195_v49 }
 0x359   :  { %2982 = vmatprep.subr.bf16.mxu0 %v4220_v61 }
 0x35b   :  { %3012 = vmatpush1.bf16.msra.mxu1 %v4206_v5 }
 0x35c   :  { %2984 = vmatpush1.bf16.msra.mxu0 %v4233_v35  ;;  %3014 = vmatprep.subr.bf16.mxu1 %v4231_v34 }
 0x35d   :  { %2986 = vmatprep.subr.bf16.mxu0 %v4256_v31 }
 0x35f   :  { %3016 = vmatpush1.bf16.msra.mxu1 %v4242_v18 }
 0x360   :  { %2988 = vmatpush1.bf16.msra.mxu0 %v4269_v52  ;;  %3018 = vmatprep.subr.bf16.mxu1 %v4267_v47 }
 0x361   :  { %3022 = vmatprep.subr.bf16.mxu0 %v4073_v9 }
 0x363   :  { %3020 = vmatpush1.bf16.msra.mxu1 %v4278_v23 }
 0x364   :  { %3054 = vmatprep.subr.bf16.mxu1 %v4331_v30 }
 0x416   :  { %v1265_v28 = vpop.f32.mrb[6].mxu0  ;;  %v1336_v39 = vpop.f32.mrb[6].mxu1 }
 0x417   :  { %v3253_v42 = vadd.f32 %v1265_v28, %v3962_v36  ;;  %v1267_v60 = vpop.f32.mrb[7].mxu0  ;;  %v1338_v12 = vpop.f32.mrb[7].mxu1  ;;  %v3269_v7 = vadd.f32 %v1336_v39, %v3968_v0 }
 0x418   :  { %v3254_v33 = vadd.f32 %v1267_v60, %v3964_v37  ;;  %v3270_v1 = vadd.f32 %v1338_v12, %v3970_v8  ;;  %v4411_v12 = vpop.permute.xlu1 %1374 }
 0x419   :  { %v2596_v43 = vmul.f32 -1.442695, %v3253_v42  ;;  %vm1376_vm12 = vcmp.eq.s32.totalorder %v4411_v12, 1 }
 0x41a   :  { %v2597_v57 = vmul.f32 -1.442695, %v3254_v33  ;;  %v2598_v63 = vmul.f32 -1.442695, %v3270_v1 }
 0x41b   :  { %3361 = vpow2.f32 %v2596_v43 }
 0x41c   :  { %3363 = vpow2.f32 %v2597_v57 }
 0x41d   :  { %3365 = vpow2.f32 %v2598_v63 }
 0x41e   :  { %3367 = vtanh.f32 %v3269_v7 }
 0x425   :  { %v3362_v22 = vpop.eup %3361 }
 0x426   :  { %v3364_v59 = vpop.eup %3363  ;;  %v1348_v10 = vadd.f32 1.0, %v3362_v22 }
 0x427   :  { %v1354_v11 = vadd.f32 1.0, %v3364_v59  ;;  %v3366_v62 = vpop.eup %3365 }
 0x428   :  { %3369 = vrcp.f32 %v1348_v10  ;;  %v3368_v25 = vpop.eup %3367  ;;  %v1361_v42 = vadd.f32 1.0, %v3366_v62 }
 0x429   :  { %3371 = vrcp.f32 %v1354_v11 }
 0x42a   :  { %3373 = vrcp.f32 %v1361_v42 }
 0x432   :  { %v3370_v48 = vpop.eup %3369 }
 0x433   :  { %v3372_v20 = vpop.eup %3371  ;;  %v1365_v28 = vmul.f32 %v3370_v48, %v3368_v25 }
 0x434   :  { %v1364_v60 = vmul.f32 %v3372_v20, %v4295_v38  ;;  %v3374_v43 = vpop.eup %3373 }
 0x436   :  { %v1366_v33 = vadd.f32 %v1365_v28, %v1364_v60 }
 0x438   :  { %3375 = vtanh.f32 %v1366_v33  ;;  %v4417_v39 = vsel %vm1376_vm12, %v1366_v33, %v4295_v38 }
 0x442   :  { %v3376_v57 = vpop.eup %3375 }
 0x443   :  { %v4419_v1 = vmul.f32 %v3376_v57, %v3374_v43 }
 0x445   :  { %v4425_v63 = vsel %vm1376_vm12, %v4419_v1, %v4303_v17 }
 0x446   :  { %1518 = vmatmul.mubr.f32.vlgmr.msra.gmra.mrb[8].mxu0 %v4425_v63  ;;  %1589 = vmatmul.mubr.f32.vlgmr.msra.gmra.mrb[8].mxu1 %v4425_v63 }
 0x447   :  { %3024 = vmatpush1.bf16.msra.mxu0 %v4081_v40  ;;  %3056 = vmatpush1.bf16.msra.mxu1 %v4339_v51 }
 0x448   :  { %3026 = vmatprep.subr.bf16.mxu0 %v4091_v15  ;;  %3058 = vmatprep.subr.bf16.mxu1 %v4349_v2 }
 0x449   :  { %1771 = vmatprep.mubr.f32.mxu0 %v3441_v3  ;;  %1842 = vmatprep.mubr.f32.mxu1 %v3441_v3 }
 0x44b   :  { %3028 = vmatpush1.bf16.msra.mxu0 %v4099_v21  ;;  %3060 = vmatpush1.bf16.msra.mxu1 %v4357_v14 }
 0x44c   :  { %3030 = vmatprep.subr.bf16.mxu0 %v4111_v32  ;;  %3062 = vmatprep.subr.bf16.mxu1 %v4367_v4 }
 0x44f   :  { %3032 = vmatpush1.bf16.msra.mxu0 %v4123_v45  ;;  %3064 = vmatpush1.bf16.msra.mxu1 %v4375_v55 }
 0x450   :  { %3034 = vmatprep.subr.bf16.mxu0 %v4126_v46  ;;  %3066 = vmatprep.subr.bf16.mxu1 %v4385_v41 }
 0x453   :  { %3036 = vmatpush1.bf16.msra.mxu0 %v4135_v54  ;;  %3068 = vmatpush1.bf16.msra.mxu1 %v4393_v27 }
 0x454   :  { %3038 = vmatprep.subr.bf16.mxu0 %v4148_v24  ;;  %3070 = vmatprep.subr.bf16.mxu1 %v4159_v44 }
 0x457   :  { %3040 = vmatpush1.bf16.msra.mxu0 %v4161_v50  ;;  %3072 = vmatpush1.bf16.msra.mxu1 %v4170_v58 }
 0x458   :  { %3042 = vmatprep.subr.bf16.mxu0 %v4184_v13  ;;  %3074 = vmatprep.subr.bf16.mxu1 %v4195_v49 }
 0x45b   :  { %3044 = vmatpush1.bf16.msra.mxu0 %v4197_v56  ;;  %3076 = vmatpush1.bf16.msra.mxu1 %v4206_v5 }
 0x45c   :  { %3046 = vmatprep.subr.bf16.mxu0 %v4220_v61  ;;  %3078 = vmatprep.subr.bf16.mxu1 %v4231_v34 }
 0x45f   :  { %3048 = vmatpush1.bf16.msra.mxu0 %v4233_v35  ;;  %3080 = vmatpush1.bf16.msra.mxu1 %v4242_v18 }
 0x460   :  { %3050 = vmatprep.subr.bf16.mxu0 %v4256_v31  ;;  %3082 = vmatprep.subr.bf16.mxu1 %v4267_v47 }
 0x463   :  { %3052 = vmatpush1.bf16.msra.mxu0 %v4269_v52  ;;  %3084 = vmatpush1.bf16.msra.mxu1 %v4278_v23 }
 0x464   :  { %3086 = vmatprep.subr.bf16.mxu0 %v4073_v9  ;;  %3118 = vmatprep.subr.bf16.mxu1 %v4331_v30 }
 0x519   :  { %v1519_v38 = vpop.f32.mrb[8].mxu0  ;;  %v1590_v17 = vpop.f32.mrb[8].mxu1 }
 0x51a   :  { %v3255_v7 = vadd.f32 %v1519_v38, %v3962_v36  ;;  %v1521_v22 = vpop.f32.mrb[9].mxu0  ;;  %v1592_v59 = vpop.f32.mrb[9].mxu1  ;;  %v3271_v20 = vadd.f32 %v1590_v17, %v3968_v0 }
 0x51b   :  { %v3256_v10 = vadd.f32 %v1521_v22, %v3964_v37  ;;  %v3272_v25 = vadd.f32 %v1592_v59, %v3970_v8  ;;  %v4468_v59 = vpop.permute.xlu0 %1628 }
 0x51c   :  { %v2600_v11 = vmul.f32 -1.442695, %v3255_v7  ;;  %vm1630_vm13 = vcmp.eq.s32.totalorder %v4468_v59, 1 }
 0x51d   :  { %v2601_v62 = vmul.f32 -1.442695, %v3256_v10  ;;  %v2602_v48 = vmul.f32 -1.442695, %v3272_v25 }
 0x51e   :  { %3377 = vpow2.f32 %v2600_v11 }
 0x51f   :  { %3379 = vpow2.f32 %v2601_v62 }
 0x520   :  { %3381 = vpow2.f32 %v2602_v48 }
 0x521   :  { %3383 = vtanh.f32 %v3271_v20 }
 0x528   :  { %v3378_v9 = vpop.eup %3377 }
 0x529   :  { %v3380_v28 = vpop.eup %3379  ;;  %v1602_v42 = vadd.f32 1.0, %v3378_v9 }
 0x52a   :  { %v1608_v60 = vadd.f32 1.0, %v3380_v28  ;;  %v3382_v33 = vpop.eup %3381 }
 0x52b   :  { %3385 = vrcp.f32 %v1602_v42  ;;  %v3384_v43 = vpop.eup %3383  ;;  %v1615_v22 = vadd.f32 1.0, %v3382_v33  ;;  %v2159_v33 = vld [vmem:[%s4821_s5 + $0x40] sm:$0xff] }
 0x52c   :  { %3387 = vrcp.f32 %v1608_v60 }
 0x52d   :  { %3389 = vrcp.f32 %v1615_v22 }
 0x535   :  { %v3386_v57 = vpop.eup %3385 }
 0x536   :  { %v3388_v38 = vpop.eup %3387  ;;  %v1619_v7 = vmul.f32 %v3386_v57, %v3384_v43  ;;  %v2163_v43 = vld [vmem:[%s4821_s5 + $0x60] sm:$0xff] }
 0x537   :  { %v1618_v10 = vmul.f32 %v3388_v38, %v4417_v39  ;;  %v3390_v62 = vpop.eup %3389  ;;  %v3155_v57 = vpack.c.bf16 %v2163_v43, %v2159_v33  ;;  %v2168_v38 = vld [vmem:[%s4821_s5 + $0x88] sm:$0xff]  ;;  %v2201_v33 = vld [vmem:[%s4821_s5 + $0x190] sm:$0xff] }
 0x539   :  { %v1620_v11 = vadd.f32 %v1619_v7, %v1618_v10  ;;  %v2172_v7 = vld [vmem:[%s4821_s5 + $0xa8] sm:$0xff]  ;;  %v2167_v10 = vld [vmem:[%s4821_s5 + $0x80] sm:$0xff] }
 0x53a   :  { %v3157_v22 = vpack.c.bf16 %v2172_v7, %v2168_v38  ;;  %v2205_v38 = vld [vmem:[%s4821_s5 + $0x1b0] sm:$0xff]  ;;  %v2208_v7 = vld [vmem:[%s4821_s5 + $0x1c8] sm:$0xff] }
 0x53b   :  { %3391 = vtanh.f32 %v1620_v11  ;;  %v4474_v17 = vsel %vm1630_vm13, %v1620_v11, %v4417_v39  ;;  %v2171_v11 = vld [vmem:[%s4821_s5 + $0xa0] sm:$0xff] }
 0x545   :  { %v3392_v25 = vpop.eup %3391 }
 0x546   :  { %v4476_v48 = vmul.f32 %v3392_v25, %v3390_v62  ;;  %v2176_v62 = vld [vmem:[%s4821_s5 + $0xc8] sm:$0xff] }
 0x547   :  { %v2180_v25 = vld [vmem:[%s4821_s5 + $0xe8] sm:$0xff] }
 0x548   :  { %v4482_v20 = vsel %vm1630_vm13, %v4476_v48, %v4425_v63 }
 0x549   :  { %1772 = vmatmul.mubr.f32.vlgmr.msra.gmra.mrb[10].mxu0 %v4482_v20  ;;  %1843 = vmatmul.mubr.f32.vlgmr.msra.gmra.mrb[10].mxu1 %v4482_v20 }
 0x54a   :  { %3088 = vmatpush1.bf16.msra.mxu0 %v4081_v40  ;;  %3120 = vmatpush1.bf16.msra.mxu1 %v4339_v51 }
 0x54b   :  { %3090 = vmatprep.subr.bf16.mxu0 %v4091_v15  ;;  %3122 = vmatprep.subr.bf16.mxu1 %v4349_v2 }
 0x54c   :  { %2025 = vmatprep.mubr.f32.mxu0 %v3441_v3  ;;  %2096 = vmatprep.mubr.f32.mxu1 %v3441_v3 }
 0x54e   :  { %3092 = vmatpush1.bf16.msra.mxu0 %v4099_v21  ;;  %3124 = vmatpush1.bf16.msra.mxu1 %v4357_v14 }
 0x54f   :  { %3094 = vmatprep.subr.bf16.mxu0 %v4111_v32  ;;  %3126 = vmatprep.subr.bf16.mxu1 %v4367_v4 }
 0x552   :  { %3096 = vmatpush1.bf16.msra.mxu0 %v4123_v45  ;;  %3128 = vmatpush1.bf16.msra.mxu1 %v4375_v55 }
 0x553   :  { %3098 = vmatprep.subr.bf16.mxu0 %v4126_v46  ;;  %3130 = vmatprep.subr.bf16.mxu1 %v4385_v41 }
 0x556   :  { %3100 = vmatpush1.bf16.msra.mxu0 %v4135_v54  ;;  %3132 = vmatpush1.bf16.msra.mxu1 %v4393_v27 }
 0x557   :  { %3102 = vmatprep.subr.bf16.mxu0 %v4148_v24  ;;  %3134 = vmatprep.subr.bf16.mxu1 %v4159_v44 }
 0x55a   :  { %3104 = vmatpush1.bf16.msra.mxu0 %v4161_v50  ;;  %3136 = vmatpush1.bf16.msra.mxu1 %v4170_v58 }
 0x55b   :  { %3106 = vmatprep.subr.bf16.mxu0 %v4184_v13  ;;  %3138 = vmatprep.subr.bf16.mxu1 %v4195_v49 }
 0x55e   :  { %3108 = vmatpush1.bf16.msra.mxu0 %v4197_v56  ;;  %3140 = vmatpush1.bf16.msra.mxu1 %v4206_v5 }
 0x55f   :  { %3110 = vmatprep.subr.bf16.mxu0 %v4220_v61  ;;  %3142 = vmatprep.subr.bf16.mxu1 %v4231_v34 }
 0x562   :  { %3112 = vmatpush1.bf16.msra.mxu0 %v4233_v35  ;;  %3144 = vmatpush1.bf16.msra.mxu1 %v4242_v18 }
 0x563   :  { %3114 = vmatprep.subr.bf16.mxu0 %v4256_v31  ;;  %3146 = vmatprep.subr.bf16.mxu1 %v4267_v47 }
 0x566   :  { %3116 = vmatpush1.bf16.msra.mxu0 %v4269_v52  ;;  %3148 = vmatpush1.bf16.msra.mxu1 %v4278_v23  ;;  %v4524_v23 = vpop.permute.xlu1 %1882 }
 0x567   :  { %3182 = vmatprep.subr.bf16.mxu1 %v4331_v30  ;;  %vm1884_vm14 = vcmp.eq.s32.totalorder %v4524_v23, 1 }
 0x61c   :  { %v1773_v40 = vpop.f32.mrb[10].mxu0  ;;  %v1844_v15 = vpop.f32.mrb[10].mxu1 }
 0x61d   :  { %v3257_v21 = vadd.f32 %v1773_v40, %v3962_v36  ;;  %v1775_v32 = vpop.f32.mrb[11].mxu0  ;;  %v1846_v45 = vpop.f32.mrb[11].mxu1  ;;  %v3273_v58 = vadd.f32 %v1844_v15, %v3968_v0  ;;  %v2175_v40 = vld [vmem:[%s4821_s5 + $0xc0] sm:$0xff] }
 0x61e   :  { %v3258_v46 = vadd.f32 %v1775_v32, %v3964_v37  ;;  %v3274_v44 = vadd.f32 %v1846_v45, %v3970_v8  ;;  %v2179_v15 = vld [vmem:[%s4821_s5 + $0xe0] sm:$0xff]  ;;  %v2184_v32 = vld [vmem:[%s4821_s5 + $0x108] sm:$0xff] }
 0x61f   :  { %v2604_v54 = vmul.f32 -1.442695, %v3257_v21  ;;  %v3163_v21 = vpack.c.bf16 %v2179_v15, %v2175_v40  ;;  %v2188_v45 = vld [vmem:[%s4821_s5 + $0x128] sm:$0xff]  ;;  %v2209_v40 = vld [vmem:[%s4821_s5 + $0x1d0] sm:$0xff] }
 0x620   :  { %v2605_v24 = vmul.f32 -1.442695, %v3258_v46  ;;  %v2606_v50 = vmul.f32 -1.442695, %v3274_v44  ;;  %v3165_v46 = vpack.c.bf16 %v2188_v45, %v2184_v32  ;;  %v2186_v44 = vld [vmem:[%s4821_s5 + $0x118] sm:$0xff]  ;;  %v2408_v32 = vld [vmem:[%s4827_s7] sm:$0xff] }
 0x621   :  { %3393 = vpow2.f32 %v2604_v54  ;;  %v2183_v54 = vld [vmem:[%s4821_s5 + $0x100] sm:$0xff]  ;;  %v2409_v45 = vld [vmem:[%s4827_s7 + $0x8] sm:$0xff] }
 0x622   :  { %3395 = vpow2.f32 %v2605_v24  ;;  %v2187_v24 = vld [vmem:[%s4821_s5 + $0x120] sm:$0xff] }
 0x623   :  { %3397 = vpow2.f32 %v2606_v50  ;;  %v3167_v50 = vpack.c.bf16 %v2187_v24, %v2183_v54  ;;  %v3213_v54 = vpack.c.bf16 %v2409_v45, %v2408_v32  ;;  %v2421_v32 = vld [vmem:[%s4827_s7 + $0x68] sm:$0xff] }
 0x624   :  { %3399 = vtanh.f32 %v3273_v58  ;;  %v2190_v58 = vld [vmem:[%s4821_s5 + $0x138] sm:$0xff] }
 0x62b   :  { %v3394_v13 = vpop.eup %3393 }
 0x62c   :  { %v3396_v49 = vpop.eup %3395  ;;  %v1856_v56 = vadd.f32 1.0, %v3394_v13  ;;  %v2185_v13 = vld [vmem:[%s4821_s5 + $0x110] sm:$0xff] }
 0x62d   :  { %v1862_v5 = vadd.f32 1.0, %v3396_v49  ;;  %v3398_v61 = vpop.eup %3397  ;;  %v2189_v49 = vld [vmem:[%s4821_s5 + $0x130] sm:$0xff] }
 0x62e   :  { %3401 = vrcp.f32 %v1856_v56  ;;  %v3400_v34 = vpop.eup %3399  ;;  %v1869_v47 = vadd.f32 1.0, %v3398_v61  ;;  %v3197_v56 = vpack.c.bf16 %v2190_v58, %v2186_v44  ;;  %v2192_v61 = vld [vmem:[%s4821_s5 + $0x148] sm:$0xff] }
 0x62f   :  { %3403 = vrcp.f32 %v1862_v5  ;;  %v3199_v5 = vpack.c.bf16 %v2189_v49, %v2185_v13 }
 0x630   :  { %3405 = vrcp.f32 %v1869_v47  ;;  %v2194_v47 = vld [vmem:[%s4821_s5 + $0x158] sm:$0xff] }
 0x638   :  { %v3402_v35 = vpop.eup %3401 }
 0x639   :  { %v3404_v18 = vpop.eup %3403  ;;  %v1873_v31 = vmul.f32 %v3402_v35, %v3400_v34  ;;  %v2196_v34 = vld [vmem:[%s4821_s5 + $0x168] sm:$0xff]  ;;  %v2191_v35 = vld [vmem:[%s4821_s5 + $0x140] sm:$0xff] }
 0x63a   :  { %v1872_v52 = vmul.f32 %v3404_v18, %v4474_v17  ;;  %v3406_v63 = vpop.eup %3405  ;;  %v3169_v18 = vpack.c.bf16 %v2196_v34, %v2192_v61 }
 0x63c   :  { %v1874_v30 = vadd.f32 %v1873_v31, %v1872_v52  ;;  %v2195_v31 = vld [vmem:[%s4821_s5 + $0x160] sm:$0xff]  ;;  %v2198_v52 = vld [vmem:[%s4821_s5 + $0x178] sm:$0xff] }
 0x63e   :  { %3407 = vtanh.f32 %v1874_v30  ;;  %v4530_v39 = vsel %vm1884_vm14, %v1874_v30, %v4474_v17  ;;  %v3159_v17 = vpack.c.bf16 %v2171_v11, %v2167_v10  ;;  %v3171_v30 = vpack.c.bf16 %v2195_v31, %v2191_v35  ;;  %v2207_v11 = vld [vmem:[%s4821_s5 + $0x1c0] sm:$0xff] }
 0x648   :  { %v3408_v9 = vpop.eup %3407 }
 0x649   :  { %v4532_v28 = vmul.f32 %v3408_v9, %v3406_v63  ;;  %v3201_v63 = vpack.c.bf16 %v2198_v52, %v2194_v47  ;;  %v2193_v9 = vld [vmem:[%s4821_s5 + $0x150] sm:$0xff] }
 0x64b   :  { %v4538_v42 = vsel %vm1884_vm14, %v4532_v28, %v4482_v20  ;;  %v3161_v20 = vpack.c.bf16 %v2180_v25, %v2176_v62  ;;  %v2210_v62 = vld [vmem:[%s4821_s5 + $0x1d8] sm:$0xff]  ;;  %v3207_v25 = vpack.c.bf16 %v2205_v38, %v2201_v33  ;;  %v2410_v33 = vld [vmem:[%s4827_s7 + $0x10] sm:$0xff] }
 0x64c   :  { %2026 = vmatmul.mubr.f32.vlgmr.msra.gmra.mrb[12].mxu0 %v4538_v42  ;;  %2097 = vmatmul.mubr.f32.vlgmr.msra.gmra.mrb[12].mxu1 %v4538_v42 }
 0x64d   :  { %3184 = vmatpush1.bf16.msra.mxu1 %v4339_v51  ;;  %2279 = vmatprep.mubr.f32.mxu0 %v3441_v3  ;;  %v2152_v51 = vld [vmem:[%s4821_s5 + $0x8] sm:$0xff] }
 0x64e   :  { %3186 = vmatprep.subr.bf16.mxu1 %v4349_v2  ;;  %2350 = vmatprep.mubr.f32.mxu1 %v3441_v3  ;;  %v2156_v2 = vld [vmem:[%s4821_s5 + $0x28] sm:$0xff]  ;;  %v2151_v3 = vld [vmem:[%s4821_s5] sm:$0xff] }
 0x64f   :  { %v3149_v60 = vpack.c.bf16 %v2156_v2, %v2152_v51  ;;  %v2197_v51 = vld [vmem:[%s4821_s5 + $0x170] sm:$0xff]  ;;  %v2200_v2 = vld [vmem:[%s4821_s5 + $0x188] sm:$0xff] }
 0x651   :  { %3188 = vmatpush1.bf16.msra.mxu1 %v4357_v14  ;;  %v2155_v14 = vld [vmem:[%s4821_s5 + $0x20] sm:$0xff]  ;;  %3150 = vmatprep.subr.bf16.mxu0 %v3149_v60  ;;  %v3203_v60 = vpack.c.bf16 %v2197_v51, %v2193_v9 }
 0x652   :  { %3190 = vmatprep.subr.bf16.mxu1 %v4367_v4  ;;  %v3151_v4 = vpack.c.bf16 %v2155_v14, %v2151_v3  ;;  %v2204_v3 = vld [vmem:[%s4821_s5 + $0x1a8] sm:$0xff]  ;;  %v2199_v14 = vld [vmem:[%s4821_s5 + $0x180] sm:$0xff] }
 0x654   :  { %3152 = vmatpush1.bf16.msra.mxu0 %v3151_v4  ;;  %v2203_v4 = vld [vmem:[%s4821_s5 + $0x1a0] sm:$0xff] }
 0x655   :  { %3192 = vmatpush1.bf16.msra.mxu1 %v4375_v55  ;;  %v2160_v55 = vld [vmem:[%s4821_s5 + $0x48] sm:$0xff]  ;;  %v3175_v43 = vpack.c.bf16 %v2203_v4, %v2199_v14  ;;  %v2137_v14 = vpop.permute.xlu0 %2136 }
 0x656   :  { %3194 = vmatprep.subr.bf16.mxu1 %v4385_v41  ;;  %v2164_v41 = vld [vmem:[%s4821_s5 + $0x68] sm:$0xff]  ;;  %vm2138_vm15 = vcmp.eq.s32.totalorder %v2137_v14, 1 }
 0x659   :  { %3196 = vmatpush1.bf16.msra.mxu1 %v4393_v27  ;;  %v3153_v27 = vpack.c.bf16 %v2164_v41, %v2160_v55  ;;  %v3173_v55 = vpack.c.bf16 %v2204_v3, %v2200_v2  ;;  %v2202_v41 = vld [vmem:[%s4821_s5 + $0x198] sm:$0xff] }
 0x65a   :  { %3198 = vmatprep.subr.bf16.mxu1 %v3197_v56 }
 0x65b   :  { %3154 = vmatprep.subr.bf16.mxu0 %v3153_v27  ;;  %v2206_v27 = vld [vmem:[%s4821_s5 + $0x1b8] sm:$0xff] }
 0x65c   :  { %3156 = vmatpush1.bf16.msra.mxu0 %v3155_v57  ;;  %v3205_v57 = vpack.c.bf16 %v2206_v27, %v2202_v41 }
 0x65d   :  { %3158 = vmatprep.subr.bf16.mxu0 %v3157_v22  ;;  %3200 = vmatpush1.bf16.msra.mxu1 %v3199_v5  ;;  %v2212_v22 = vld [vmem:[%s4821_s5 + $0x1e8] sm:$0xff] }
 0x65e   :  { %3202 = vmatprep.subr.bf16.mxu1 %v3201_v63  ;;  %v3177_v10 = vpack.c.bf16 %v2212_v22, %v2208_v7 }
 0x660   :  { %3160 = vmatpush1.bf16.msra.mxu0 %v3159_v17  ;;  %v2211_v17 = vld [vmem:[%s4821_s5 + $0x1e0] sm:$0xff] }
 0x661   :  { %3162 = vmatprep.subr.bf16.mxu0 %v3161_v20  ;;  %3204 = vmatpush1.bf16.msra.mxu1 %v3203_v60  ;;  %v2214_v20 = vld [vmem:[%s4821_s5 + $0x1f8] sm:$0xff] }
 0x662   :  { %3206 = vmatprep.subr.bf16.mxu1 %v3205_v57  ;;  %v3209_v15 = vpack.c.bf16 %v2214_v20, %v2210_v62  ;;  %v2418_v20 = vld [vmem:[%s4827_s7 + $0x50] sm:$0xff] }
 0x664   :  { %3164 = vmatpush1.bf16.msra.mxu0 %v3163_v21  ;;  %v2213_v21 = vld [vmem:[%s4821_s5 + $0x1f0] sm:$0xff] }
 0x665   :  { %3166 = vmatprep.subr.bf16.mxu0 %v3165_v46  ;;  %v3179_v46 = vpack.c.bf16 %v2211_v17, %v2207_v11  ;;  %3208 = vmatpush1.bf16.msra.mxu1 %v3207_v25  ;;  %v3211_v24 = vpack.c.bf16 %v2213_v21, %v2209_v40  ;;  %v2414_v11 = vld [vmem:[%s4827_s7 + $0x30] sm:$0xff]  ;;  %v2415_v17 = vld [vmem:[%s4827_s7 + $0x38] sm:$0xff]  ;;  %v2416_v25 = vld [vmem:[%s4827_s7 + $0x40] sm:$0xff] }
 0x666   :  { %3210 = vmatprep.subr.bf16.mxu1 %v3209_v15  ;;  %v3225_v62 = vpack.c.bf16 %v2415_v17, %v2414_v11  ;;  %v2419_v40 = vld [vmem:[%s4827_s7 + $0x58] sm:$0xff]  ;;  %v2420_v21 = vld [vmem:[%s4827_s7 + $0x60] sm:$0xff] }
 0x667   :  { %v3233_v15 = vpack.c.bf16 %v2419_v40, %v2418_v20  ;;  %v3237_v45 = vpack.c.bf16 %v2421_v32, %v2420_v21 }
 0x668   :  { %3168 = vmatpush1.bf16.msra.mxu0 %v3167_v50 }
 0x669   :  { %3170 = vmatprep.subr.bf16.mxu0 %v3169_v18  ;;  %3212 = vmatpush1.bf16.msra.mxu1 %v3211_v24 }
 0x66c   :  { %3172 = vmatpush1.bf16.msra.mxu0 %v3171_v30 }
 0x66d   :  { %3174 = vmatprep.subr.bf16.mxu0 %v3173_v55 }
 0x670   :  { %3176 = vmatpush1.bf16.msra.mxu0 %v3175_v43  ;;  %v2411_v43 = vld [vmem:[%s4827_s7 + $0x18] sm:$0xff] }
 0x671   :  { %3178 = vmatprep.subr.bf16.mxu0 %v3177_v10  ;;  %v3217_v7 = vpack.c.bf16 %v2411_v43, %v2410_v33  ;;  %v2413_v10 = vld [vmem:[%s4827_s7 + $0x28] sm:$0xff] }
 0x674   :  { %3180 = vmatpush1.bf16.msra.mxu0 %v3179_v46  ;;  %v2422_v46 = vld [vmem:[%s4827_s7 + $0x70] sm:$0xff] }
 0x675   :  { %3214 = vmatprep.subr.bf16.mxu0 %v3213_v54 }
 0x71f   :  { %v2027_v44 = vpop.f32.mrb[12].mxu0  ;;  %v2098_v50 = vpop.f32.mrb[12].mxu1 }
 0x720   :  { %v3259_v58 = vadd.f32 %v2027_v44, %v3962_v36  ;;  %v2029_v13 = vpop.f32.mrb[13].mxu0  ;;  %v2100_v49 = vpop.f32.mrb[13].mxu1  ;;  %v3275_v18 = vadd.f32 %v2098_v50, %v3968_v0 }
 0x721   :  { %v3260_v56 = vadd.f32 %v2029_v13, %v3964_v37  ;;  %v3276_v34 = vadd.f32 %v2100_v49, %v3970_v8 }
 0x722   :  { %v2608_v5 = vmul.f32 -1.442695, %v3259_v58 }
 0x723   :  { %v2609_v61 = vmul.f32 -1.442695, %v3260_v56  ;;  %v2610_v35 = vmul.f32 -1.442695, %v3276_v34 }
 0x724   :  { %3409 = vpow2.f32 %v2608_v5 }
 0x725   :  { %3411 = vpow2.f32 %v2609_v61 }
 0x726   :  { %3413 = vpow2.f32 %v2610_v35  ;;  %v2391_v35 = vpop.permute.xlu1 %2390 }
 0x727   :  { %3415 = vtanh.f32 %v3275_v18  ;;  %vm2392_vm0 = vcmp.eq.s32.totalorder %v2391_v35, 1 }
 0x72e   :  { %v3410_v31 = vpop.eup %3409 }
 0x72f   :  { %v3412_v47 = vpop.eup %3411  ;;  %v2110_v52 = vadd.f32 1.0, %v3410_v31 }
 0x730   :  { %v2116_v30 = vadd.f32 1.0, %v3412_v47  ;;  %v3414_v63 = vpop.eup %3413 }
 0x731   :  { %3417 = vrcp.f32 %v2110_v52  ;;  %v3416_v9 = vpop.eup %3415  ;;  %v2123_v3 = vadd.f32 1.0, %v3414_v63 }
 0x732   :  { %3419 = vrcp.f32 %v2116_v30 }
 0x733   :  { %3421 = vrcp.f32 %v2123_v3 }
 0x73b   :  { %v3418_v51 = vpop.eup %3417 }
 0x73c   :  { %v3420_v2 = vpop.eup %3419  ;;  %v2127_v60 = vmul.f32 %v3418_v51, %v3416_v9 }
 0x73d   :  { %v2126_v4 = vmul.f32 %v3420_v2, %v4530_v39  ;;  %v3422_v27 = vpop.eup %3421 }
 0x73f   :  { %v2128_v55 = vadd.f32 %v2127_v60, %v2126_v4 }
 0x741   :  { %3423 = vtanh.f32 %v2128_v55  ;;  %v4708_v41 = vsel %vm2138_vm15, %v2128_v55, %v4530_v39  ;;  %v2412_v39 = vld [vmem:[%s4827_s7 + $0x20] sm:$0xff] }
 0x74b   :  { %v3424_v57 = vpop.eup %3423 }
 0x74c   :  { %v2130_v38 = vmul.f32 %v3424_v57, %v3422_v27 }
 0x74e   :  { %v4718_v22 = vsel %vm2138_vm15, %v2130_v38, %v4538_v42  ;;  %v3221_v42 = vpack.c.bf16 %v2413_v10, %v2412_v39 }
 0x74f   :  { %2280 = vmatmul.mubr.f32.vlgmr.msra.gmra.mrb[14].mxu0 %v4718_v22  ;;  %2351 = vmatmul.mubr.f32.vlgmr.msra.gmra.mrb[14].mxu1 %v4718_v22 }
 0x750   :  { %3216 = vmatpush3.bf16.msra.mxu0 %v3213_v54  ;;  %2681 = vmatprep.mubr.msk.f32.mxu0 %vm615_vm5, %v3984_v53  ;;  %v3229_v53 = vpack.c.bf16 %v2417_v29, %v2416_v25  ;;  %v2423_v54 = vld [vmem:[%s4827_s7 + $0x78] sm:$0xff] }
 0x751   :  { %3218 = vmatprep.subr.bf16.mxu0 %v3217_v7  ;;  %v3241_v24 = vpack.c.bf16 %v2423_v54, %v2422_v46 }
 0x754   :  { %3220 = vmatpush3.bf16.msra.mxu0 %v3217_v7 }
 0x755   :  { %3222 = vmatprep.subr.bf16.mxu0 %v3221_v42 }
 0x758   :  { %3224 = vmatpush3.bf16.msra.mxu0 %v3221_v42 }
 0x759   :  { %3226 = vmatprep.subr.bf16.mxu0 %v3225_v62 }
 0x75c   :  { %3228 = vmatpush3.bf16.msra.mxu0 %v3225_v62 }
 0x75d   :  { %3230 = vmatprep.subr.bf16.mxu0 %v3229_v53 }
 0x760   :  { %3232 = vmatpush3.bf16.msra.mxu0 %v3229_v53 }
 0x761   :  { %3234 = vmatprep.subr.bf16.mxu0 %v3233_v15 }
 0x764   :  { %3236 = vmatpush3.bf16.msra.mxu0 %v3233_v15 }
 0x765   :  { %3238 = vmatprep.subr.bf16.mxu0 %v3237_v45 }
 0x768   :  { %3240 = vmatpush3.bf16.msra.mxu0 %v3237_v45 }
 0x769   :  { %3242 = vmatprep.subr.bf16.mxu0 %v3241_v24 }
 0x76c   :  { %3244 = vmatpush3.bf16.msra.mxu0 %v3241_v24 }
 0x76f   :  { %2682 = vmatmul.mubr.msk.f32.vlgmr.msra.gmra.mrb[16].mxu0 %vm868_vm10, %v4048_v6 }
 0x770   :  { %2684 = vmatprep.mubr.msk.f32.mxu0 %vm1122_vm11, %v4297_v16 }
 0x773   :  { %2685 = vmatmul.mubr.msk.f32.gmra.mrb[18].mxu0 %vm1376_vm12, %v4419_v1 }
 0x774   :  { %2687 = vmatprep.mubr.msk.f32.mxu0 %vm1630_vm13, %v4476_v48 }
 0x777   :  { %2688 = vmatmul.mubr.msk.f32.gmra.mrb[20].mxu0 %vm1884_vm14, %v4532_v28 }
 0x778   :  { %2690 = vmatprep.mubr.msk.f32.mxu0 %vm2138_vm15, %v2130_v38 }
 0x822   :  { %v2281_v19 = vpop.f32.mrb[14].mxu0  ;;  %v2352_v6 = vpop.f32.mrb[14].mxu1 }
 0x823   :  { %v3261_v44 = vadd.f32 %v2281_v19, %v3962_v36  ;;  %v2283_v26 = vpop.f32.mrb[15].mxu0  ;;  %v2354_v16 = vpop.f32.mrb[15].mxu1  ;;  %v3277_v23 = vadd.f32 %v2352_v6, %v3968_v0  ;;  %v2616_v0 = vld [vmem:[%s4828_s8] ss:$0 sm:$0xff] }
 0x824   :  { %v3262_v50 = vadd.f32 %v2283_v26, %v3964_v37  ;;  %v3278_v59 = vadd.f32 %v2354_v16, %v3970_v8 }
 0x825   :  { %v2612_v12 = vmul.f32 -1.442695, %v3261_v44 }
 0x826   :  { %v2613_v1 = vmul.f32 -1.442695, %v3262_v50  ;;  %v2614_v48 = vmul.f32 -1.442695, %v3278_v59 }
 0x827   :  { %3425 = vpow2.f32 %v2612_v12 }
 0x828   :  { %3427 = vpow2.f32 %v2613_v1 }
 0x829   :  { %3429 = vpow2.f32 %v2614_v48 }
 0x82a   :  { %3431 = vtanh.f32 %v3277_v23 }
 0x831   :  { %v3426_v28 = vpop.eup %3425 }
 0x832   :  { %v3428_v58 = vpop.eup %3427  ;;  %v2364_v13 = vadd.f32 1.0, %v3426_v28 }
 0x833   :  { %v2370_v49 = vadd.f32 1.0, %v3428_v58  ;;  %v3430_v36 = vpop.eup %3429 }
 0x834   :  { %3433 = vrcp.f32 %v2364_v13  ;;  %v3432_v56 = vpop.eup %3431  ;;  %v2377_v34 = vadd.f32 1.0, %v3430_v36 }
 0x835   :  { %3435 = vrcp.f32 %v2370_v49 }
 0x836   :  { %3437 = vrcp.f32 %v2377_v34 }
 0x83e   :  { %v3434_v37 = vpop.eup %3433 }
 0x83f   :  { %v3436_v5 = vpop.eup %3435  ;;  %v2381_v61 = vmul.f32 %v3434_v37, %v3432_v56 }
 0x840   :  { %v2380_v8 = vmul.f32 %v3436_v5, %v4708_v41 }
 0x842   :  { %v2382_v18 = vadd.f32 %v2381_v61, %v2380_v8  ;;  %v2683_v31 = vpop.f32.mrb[16].mxu0 }
 0x843   :  { %v2503_v47 = vadd.f32 %v2683_v31, %v2616_v0  ;;  %v2497_v52 = vpop.f32.mrb[17].mxu0 }
 0x844   :  { %v2394_v30 = vsel %vm2392_vm0, %v2382_v18, %v4708_v41  ;;  %v2498_v63 = vadd.f32 %v2616_v0, %v2497_v52  ;;  %3439 = vtanh.f32 %v2382_v18  ;;  %v3438_v41 = vpop.eup %3437 }
 0x845   :  { %2548 = vst [vmem:[%s4829_s11] sm:$0xff] %v2394_v30  ;;  %2537 = vst [vmem:[%s4830_s9 + $0x8] sm:$0xff] %v2503_v47 }
 0x846   :  { %2536 = vst [vmem:[%s4830_s9] sm:$0xff] %v2498_v63  ;;  %v2686_v9 = vpop.f32.mrb[18].mxu0 }
 0x847   :  { %v2513_v51 = vadd.f32 %v2686_v9, %v2616_v0  ;;  %v2507_v2 = vpop.f32.mrb[19].mxu0 }
 0x848   :  { %v2508_v60 = vadd.f32 %v2616_v0, %v2507_v2 }
 0x849   :  { %2539 = vst [vmem:[%s4830_s9 + $0x18] sm:$0xff] %v2513_v51 }
 0x84a   :  { %2538 = vst [vmem:[%s4830_s9 + $0x10] sm:$0xff] %v2508_v60  ;;  %v2689_v3 = vpop.f32.mrb[20].mxu0 }
 0x84b   :  { %v2523_v14 = vadd.f32 %v2689_v3, %v2616_v0  ;;  %v2517_v4 = vpop.f32.mrb[21].mxu0 }
 0x84c   :  { %v2518_v55 = vadd.f32 %v2616_v0, %v2517_v4 }
 0x84d   :  { %2541 = vst [vmem:[%s4830_s9 + $0x28] sm:$0xff] %v2523_v14 }
 0x84e   :  { %v3440_v27 = vpop.eup %3439  ;;  %2540 = vst [vmem:[%s4830_s9 + $0x20] sm:$0xff] %v2518_v55 }
 0x84f   :  { %v2384_v33 = vmul.f32 %v3440_v27, %v3438_v41 }
 0x851   :  { %v2393_v43 = vsel %vm2392_vm0, %v2384_v33, %v4718_v22  ;;  %2691 = vmatmul.mubr.msk.f32.gmra.mrb[22].mxu0 %vm2392_vm0, %v2384_v33 }
 0x852   :  { %2547 = vst [vmem:[%s4831_s10] sm:$0xff] %v2393_v43 }
 0x924   :  { %v2692_v57 = vpop.f32.mrb[22].mxu0 }
 0x925   :  { %v2533_v38 = vadd.f32 %v2692_v57, %v2616_v0  ;;  %v2527_v7 = vpop.f32.mrb[23].mxu0 }
 0x926   :  { %v2528_v39 = vadd.f32 %v2616_v0, %v2527_v7 }
 0x927   :  { %2543 = vst [vmem:[%s4830_s9 + $0x38] sm:$0xff] %v2533_v38 }
 0x928   :  { %2542 = vst [vmem:[%s4830_s9 + $0x30] sm:$0xff] %v2528_v39 }

</bundles_post_ra>
